<compile_context>
chip_gen: v7x
topology: tpu7x:2x2x1
jax: 0.10.0
libtpu: 0.0.40
codegen_flags: <defaults>
</compile_context>

<pallas_src>
import functools
import math

import jax
import jax.numpy as jnp
from jax.experimental import pallas as pl
from jax.experimental.pallas import tpu as pltpu


# ------------------------------ Pallas kernel -------------------------------

def _conv_in_kernel(x_ref, w_ref, b_ref, o_ref):
    """One row-block: out = x @ W + b.  Single MXU matmul, f32 accumulation.

    x_ref : (1, rows, K)    im2col rows, K = 27*Cin, order (dt,dh,dw,cin)
    w_ref : (K, Cout)       fused (3,3,3) conv weight
    b_ref : (1, Cout)       fused bias (f32)
    o_ref : (1, rows, Cout) output (cast on store)
    """
    acc = jnp.dot(x_ref[0], w_ref[...], preferred_element_type=jnp.float32)
    o_ref[0] = (acc + b_ref[...]).astype(o_ref.dtype)


def _pick_t_block(T, HW, max_rows):
    """Largest divisor of T with t_block*HW <= max_rows (grid-exact, no row padding)."""
    best = 1
    for tb in range(1, T + 1):
        if T % tb == 0 and tb * HW <= max_rows:
            best = tb
    return best


def causal_conv_in(x, w1, b1, w2, b2, *, compute_dtype=jnp.float32,
                   out_dtype=jnp.float32, max_rows_per_block=4096):
    """Fused conv_in.  x: (B,T,H,W,Cin) channels-last -> (B,T,H,W,Cout) in out_dtype.

    w1: (3,3,Cin,C)  spatial (1,3,3) conv weight,  b1: (C,)
    w2: (3,C,Cout)   temporal (3,1,1) conv weight, b2: (Cout,)
    """
    B, T, H, W, Cin = x.shape
    Cout = w2.shape[-1]
    HW = H * W
    assert HW % 8 == 0, "H*W must be a multiple of 8 (sublane alignment)"
    # TODO(synk): for H*W not a multiple of 8, pad rows and slice the output.
    K = 27 * Cin

    # --- fold the two linear convs into one effective (3,3,3) conv (exact) ---
    hi = jax.lax.Precision.HIGHEST
    w_eff = jnp.einsum("hwic,tco->thwio", w1, w2, precision=hi)     # (3,3,3,Cin,Cout)
    wk = w_eff.reshape(K, Cout).astype(compute_dtype)               # rows=(dt,dh,dw,cin)
    b_eff = (b2 + jnp.einsum("tco,c->o", w2, b1, precision=hi))
    b_eff = b_eff.astype(jnp.float32).reshape(1, Cout)

    # --- prologue: cast first (bf16 path writes bf16 intermediates), causal temporal
    #     pad (replicate first frame x2; exact because the spatial conv has time
    #     kernel 1), spatial zero pad, then full (dt,dh,dw) im2col of the small
    #     Cin-channel input -> K = 27*Cin contraction rows ---
    xc = x.astype(compute_dtype)
    x_rep = jnp.concatenate([xc[:, :1], xc[:, :1], xc], axis=1)       # (B,T+2,H,W,Cin)
    xp = jnp.pad(x_rep, ((0, 0), (0, 0), (1, 1), (1, 1), (0, 0)))     # (B,T+2,H+2,W+2,Cin)
    taps = [xp[:, dt:dt + T, dh:dh + H, dw:dw + W, :]
            for dt in range(3) for dh in range(3) for dw in range(3)]
    xcols = jnp.stack(taps, axis=-2).reshape(B, T * HW, K)            # (B, M, 27*Cin)

    # --- grid: one step per (batch, block of frames) ---
    t_block = _pick_t_block(T, HW, max_rows_per_block)
    rows = t_block * HW
    M = T * HW
    num_blocks = M // rows

    cdt = jnp.dtype(compute_dtype).itemsize
    cost = pl.CostEstimate(
        flops=2 * B * M * K * Cout,
        transcendentals=0,
        bytes_accessed=(B * M * K * cdt + K * Cout * cdt + Cout * 4
                        + B * M * Cout * jnp.dtype(out_dtype).itemsize))

    # TODO(synk): for production H*W re-derive rows/VMEM for v7x's 64 MiB VMEM
    # (double-buffered (rows, K->128-lane-padded) input + (rows, Cout) output + weights).
    out = pl.pallas_call(
        _conv_in_kernel,
        out_shape=jax.ShapeDtypeStruct((B, M, Cout), out_dtype),
        grid=(B, num_blocks),
        in_specs=[
            pl.BlockSpec((1, rows, K), lambda b, r: (b, r, 0)),
            pl.BlockSpec((K, Cout), lambda b, r: (0, 0)),
            pl.BlockSpec((1, Cout), lambda b, r: (0, 0)),
        ],
        out_specs=pl.BlockSpec((1, rows, Cout), lambda b, r: (b, r, 0)),
        compiler_params=pltpu.CompilerParams(
            dimension_semantics=("parallel", "parallel")),
        cost_estimate=cost,
    )(xcols, wk, b_eff)
    return out.reshape(B, T, H, W, Cout)


# ------------------------------ Module wrapper -------------------------------

def patcher3d_rearrange(x, patch_size):
    """Patcher3D(patch_size, 'rearrange'): b c (t p)(h p)(w p) -> b (c p p p) t h w."""
    if patch_size == 1:
        return x
    B, C, Tp, Hp, Wp = x.shape
    p = patch_size
    x = x.reshape(B, C, Tp // p, p, Hp // p, p, Wp // p, p)
    x = x.transpose(0, 1, 3, 5, 7, 2, 4, 6)
    return x.reshape(B, C * p ** 3, Tp // p, Hp // p, Wp // p)
# TODO(synk): 'haar' / PaddedPatcher3D patch methods are not implemented.


def encoder_down_only_forward(params, x_ncthw, *, patch_size=1,
                              compute_dtype=jnp.float32, out_dtype=jnp.float32,
                              channels_last_output=False):
    x = patcher3d_rearrange(x_ncthw, patch_size)
    x = jnp.transpose(x, (0, 2, 3, 4, 1))          # NCTHW -> (B,T,H,W,C)
    h = causal_conv_in(x, *params["conv_s"], *params["conv_t"],
                       compute_dtype=compute_dtype, out_dtype=out_dtype)
    if channels_last_output:
        return h                                   # lane-dense, skips extra HBM pass
    return jnp.transpose(h, (0, 4, 1, 2, 3))       # module-native NCTHW layout


def conv_in_reference(params, x_ncthw, patch_size=1):
    """Pure-JAX reference (two sequential convs, no fusion) for validation."""
    hi = jax.lax.Precision.HIGHEST
    x = patcher3d_rearrange(x_ncthw, patch_size)
    w1, b1 = params["conv_s"]
    w2, b2 = params["conv_t"]
    k1 = jnp.transpose(w1, (3, 2, 0, 1))[:, :, None, :, :]      # (O,I,1,3,3)
    h = jax.lax.conv_general_dilated(
        x, k1, window_strides=(1, 1, 1),
        padding=((0, 0), (1, 1), (1, 1)),
        dimension_numbers=("NCDHW", "OIDHW", "NCDHW"), precision=hi)
    h = h + b1[None, :, None, None, None]
    h = jnp.concatenate([h[:, :, :1], h[:, :, :1], h], axis=2)  # causal time pad
    k2 = jnp.transpose(w2, (2, 1, 0))[:, :, :, None, None]      # (O,I,3,1,1)
    y = jax.lax.conv_general_dilated(
        h, k2, window_strides=(1, 1, 1),
        padding=((0, 0), (0, 0), (0, 0)),
        dimension_numbers=("NCDHW", "OIDHW", "NCDHW"), precision=hi)
    return y + b2[None, :, None, None, None]


# ------------------------------ Parameter init -------------------------------

def init_params(key, *, in_channels, channels, patch_size=1):
    cin = in_channels * patch_size ** 3
    k1, k2, k3, k4 = jax.random.split(key, 4)
    std_s = 1.0 / math.sqrt(9 * cin)
    std_t = 1.0 / math.sqrt(3 * channels)
    return {
        "conv_s": (jax.random.normal(k1, (3, 3, cin, channels), jnp.float32) * std_s,
                   jax.random.normal(k2, (channels,), jnp.float32) * 0.02),
        "conv_t": (jax.random.normal(k3, (3, channels, channels), jnp.float32) * std_t,
                   jax.random.normal(k4, (channels,), jnp.float32) * 0.02),
    }


# ---------------------------------- Main -------------------------------------

if __name__ == "__main__":
    B, in_channels, T, H, W = 2, 3, 5, 16, 16
    channels = 128            # Cout == 128 -> lane-dense output stores
    patch_size = 1

    key = jax.random.PRNGKey(0)
    pkey, xkey = jax.random.split(key)
    params = init_params(pkey, in_channels=in_channels, channels=channels,
                         patch_size=patch_size)
    x = jax.random.normal(
        xkey, (B, in_channels, T * patch_size, H * patch_size, W * patch_size),
        jnp.float32)

    y_ref = jax.block_until_ready(conv_in_reference(params, x, patch_size))
    scale = float(jnp.max(jnp.abs(y_ref))) + 1.0

    # f32 path (module-native NCTHW output), checked against the sequential-conv ref.
    fwd_f32 = jax.jit(functools.partial(
        encoder_down_only_forward, patch_size=patch_size,
        compute_dtype=jnp.float32, out_dtype=jnp.float32))
    y32 = jax.block_until_ready(fwd_f32(params, x))
    assert y32.shape == (B, channels, T, H, W), y32.shape
    err32 = float(jnp.max(jnp.abs(y32 - y_ref)))
    assert err32 <= 2e-3 * scale, (err32, scale)

    # bf16-input / f32-accumulate / bf16-output, channels-last fast path
    # (halves HBM bytes on the dominant output tensor, skips the NCTHW transpose).
    fwd_bf16 = jax.jit(functools.partial(
        encoder_down_only_forward, patch_size=patch_size,
        compute_dtype=jnp.bfloat16, out_dtype=jnp.bfloat16,
        channels_last_output=True))
    y16 = jax.block_until_ready(fwd_bf16(params, x))
    assert y16.shape == (B, T, H, W, channels), y16.shape
    y_ref_cl = jnp.transpose(y_ref, (0, 2, 3, 4, 1))
    err16 = float(jnp.max(jnp.abs(y16.astype(jnp.float32) - y_ref_cl)))
    assert err16 <= 5e-2 * scale, (err16, scale)

    print("KERNEL_OK")
</pallas_src>

<mosaic_0001>
module attributes {stable_mosaic.version = 11 : i64} {
  func.func @_conv_in_kernel(%arg0: i32, %arg1: i32, %arg2: memref<1x1280x81xf32, #tpu.memory_space<vmem>>, %arg3: memref<81x128xf32, #tpu.memory_space<vmem>>, %arg4: memref<1x128xf32, #tpu.memory_space<vmem>>, %arg5: memref<1x1280x128xf32, #tpu.memory_space<vmem>>) attributes {dimension_semantics = [#tpu.dimension_semantics<parallel>, #tpu.dimension_semantics<parallel>], iteration_bounds = array<i64: 2, 1>, scalar_prefetch = 0 : i64, scratch_operands = 0 : i64, tpu.core_type = #tpu.core_type<tc>, window_params = [{transform_indices = @transform_0, window_bounds = array<i64: 1, 1280, 81>}, {pipeline_mode = #tpu.pipeline_mode<synchronous>, transform_indices = @transform_1, window_bounds = array<i64: 81, 128>}, {pipeline_mode = #tpu.pipeline_mode<synchronous>, transform_indices = @transform_2, window_bounds = array<i64: 1, 128>}, {transform_indices = @transform_3, window_bounds = array<i64: 1, 1280, 128>}]} {
    %c0 = arith.constant 0 : index
    %c0_0 = arith.constant 0 : index
    %c0_1 = arith.constant 0 : index
    %0 = vector.load %arg2[%c0, %c0_0, %c0_1] : memref<1x1280x81xf32, #tpu.memory_space<vmem>>, vector<1x1280x81xf32>
    %1 = vector.shape_cast %0 : vector<1x1280x81xf32> to vector<1280x81xf32>
    %c0_2 = arith.constant 0 : index
    %c0_3 = arith.constant 0 : index
    %2 = vector.load %arg3[%c0_2, %c0_3] : memref<81x128xf32, #tpu.memory_space<vmem>>, vector<81x128xf32>
    %cst = arith.constant dense<0.000000e+00> : vector<1280x128xf32>
    %3 = tpu.matmul %1, %2, %cst {dimension_numbers = #tpu.dot_dimension_numbers<[1], [0], [0], [1], [0, 0, 1, 1], [], []>} : vector<1280x81xf32>, vector<81x128xf32>, vector<1280x128xf32> -> vector<1280x128xf32>
    %c0_4 = arith.constant 0 : index
    %c0_5 = arith.constant 0 : index
    %4 = vector.load %arg4[%c0_4, %c0_5] : memref<1x128xf32, #tpu.memory_space<vmem>>, vector<1x128xf32>
    %5 = vector.broadcast %4 : vector<1x128xf32> to vector<1280x128xf32>
    %6 = arith.addf %3, %5 : vector<1280x128xf32>
    %c0_6 = arith.constant 0 : index
    %c0_7 = arith.constant 0 : index
    %c0_8 = arith.constant 0 : index
    %7 = vector.load %arg5[%c0_6, %c0_7, %c0_8] : memref<1x1280x128xf32, #tpu.memory_space<vmem>>, vector<1x1280x128xf32>
    %8 = vector.shape_cast %7 : vector<1x1280x128xf32> to vector<1280x128xf32>
    %9 = vector.shape_cast %6 : vector<1280x128xf32> to vector<1x1280x128xf32>
    tpu.vector_store %arg5[%c0_6, %c0_7, %c0_8], %9 {strides = array<i32>} : memref<1x1280x128xf32, #tpu.memory_space<vmem>>, vector<1x1280x128xf32>,
    return
  }
  func.func @transform_0(%arg0: i32, %arg1: i32) -> (i32, i32, i32) {
    %c0_i32 = arith.constant 0 : i32
    %c0_i32_0 = arith.constant 0 : i32
    return %arg0, %arg1, %c0_i32 : i32, i32, i32
  }
  func.func @transform_1(%arg0: i32, %arg1: i32) -> (i32, i32) {
    %c0_i32 = arith.constant 0 : i32
    %c0_i32_0 = arith.constant 0 : i32
    %c0_i32_1 = arith.constant 0 : i32
    return %c0_i32, %c0_i32_0 : i32, i32
  }
  func.func @transform_2(%arg0: i32, %arg1: i32) -> (i32, i32) {
    %c0_i32 = arith.constant 0 : i32
    %c0_i32_0 = arith.constant 0 : i32
    %c0_i32_1 = arith.constant 0 : i32
    return %c0_i32, %c0_i32_0 : i32, i32
  }
  func.func @transform_3(%arg0: i32, %arg1: i32) -> (i32, i32, i32) {
    %c0_i32 = arith.constant 0 : i32
    %c0_i32_0 = arith.constant 0 : i32
    return %arg0, %arg1, %c0_i32 : i32, i32, i32
  }
}

</mosaic_0001>

<bundles_post_ra>
// kernel: encoder_down_only_forward.1
= control target key start
LH: loop header
LB: loop body
LE: loop exit
PB: predicated region body
PF: predicated region fallthrough
CT: control target
= control target key end

     0   :  { %8 = vsyncpa [#allocation3], 0  ;;  %s3584_s0 = inlined_call_operand.vmem [shape: f32[2,1280,81], index: 0, kind: input, shape index: {}]   ;;  %s3585_s1 = inlined_call_operand.vmem [shape: f32[81,128], index: 1, kind: input, shape index: {}]   ;;  %s3586_s2 = inlined_call_operand.vmem [shape: f32[1,128], index: 2, kind: input, shape index: {}]   ;;  %s3587_s3 = inlined_call_operand.hbm [shape: f32[2,1280,128], index: 3, kind: output, shape index: {}]  }
   0x1   :  { %10 = vsyncpa [#allocation3 + $0x1], 0  ;;  %s2782_s12 = smov 0   ;;  %s2784_s13 = smov 0  }
   0x2   :  { %s2786_s14 = smov 0   ;;  %s2788_s15 = smov 0  }
   0x3   :  { %s2790_s16 = smov 0   ;;  %s2792_s17 = smov 0  }
   0x4 LB: > { %s1983_s18 = sadd.s32 4294967295, %s2757_s17   ;;  %s1984_s19 = sadd.s32 4294967294, %s2757_s17   ;;  %s2757_s17 = sphi %s2792_s17, %s16_s17   ;;  %s2753_s16 = sphi %s2790_s16, %s3594_s16   ;;  %s2749_s15 = sphi %s2788_s15, %s3593_s15   ;;  %s2745_s14 = sphi %s2786_s14, %s3592_s14   ;;  %s2741_s13 = sphi %s2784_s13, %s3591_s13   ;;  %s2737_s12 = sphi %s2782_s12, %s3590_s12  }
   0x5   : > { %s28_s20 = sadd.s32 1, %s2753_s16  ;;  %s107_s21 = sadd.s32 1, %s2745_s14 }
   0x6   : > { %p30_p0 = scmp.ge.s32.totalorder %s28_s20, 2  ;;  %p117_p1 = scmp.ne.s32.totalorder %s2745_s14, %s2741_s13 }
   0x7   : > { %p118_p2 = scmp.eq.s32.totalorder %s1983_s18, 1  ;;  %p123_p3 = scmp.ne.s32.totalorder %s2741_s13, %s2737_s12 }
   0x8   : > { %s3596_s20 = smov (%p30_p0, %s28_s20), 0  ;;  %p124_p5 = scmp.eq.s32.totalorder %s1984_s19, 1 }
   0x9   : > { %p2822_p4 = por %p118_p2, %p117_p1  ;;  %s102_s23 = ssub.s32 %s2753_s16, %s3596_s20 }
   0xa   : > { %p1987_p6 = scmp.ge.s32.totalorder %s2757_s17, 1  ;;  %p105_p7 = scmp.eq.s32.totalorder %s102_s23, 0 }
   0xb   : > { %p2829_p8 = por %p124_p5, %p123_p3  ;;  %p161_p9 = scmp.lt.s32.totalorder %s2757_s17, 3 }
   0xc   : > { %s2835_s25 = scalar_select %p105_p7, %s2745_s14, %s107_s21  }
   0xd   : > { %p162_p10 = pnand %p1987_p6, %p161_p9 }
   0xe   : > { %v360_v0 = vld [vmem:[%s3585_s1] sm:$0xff] (!%p162_p10)  ;;  %v361_v1 = vld [vmem:[%s3585_s1 + $0x8] sm:$0xff] (!%p162_p10)  ;;  %v362_v2 = vld [vmem:[%s3585_s1 + $0x10] sm:$0xff] (!%p162_p10)  ;;  %p190_p11 = scmp.lt.s32.totalorder (!%p162_p10), %s2749_s15, 1  ;;  %vm378_vm0 = vcmask (!%p162_p10), 662528   ;;  %vm859_vm1 = vcmask (!%p162_p10), 1040384  }
   0xf   : > { %165 = sbr.rel (%p162_p10) target bundleno = 425 (0x1a9), region = 32  ;;  %v2587_v3 = vpack.c.bf16 (!%p162_p10), %v361_v1, %v360_v0  ;;  %v363_v4 = vld [vmem:[%s3585_s1 + $0x18] sm:$0xff] (!%p162_p10)  ;;  %v364_v6 = vld [vmem:[%s3585_s1 + $0x20] sm:$0xff] (!%p162_p10)  ;;  %v365_v7 = vld [vmem:[%s3585_s1 + $0x28] sm:$0xff] (!%p162_p10)  ;;  %s186_s9 = sand.u32 (!%p162_p10), 1, %s2741_s13  }
  0x10   : > { %v2591_v5 = vpack.c.bf16 (!%p162_p10), %v363_v4, %v362_v2  ;;  %v2595_v8 = vpack.c.bf16 (!%p162_p10), %v365_v7, %v364_v6  ;;  %v366_v9 = vld [vmem:[%s3585_s1 + $0x30] sm:$0xff] (!%p162_p10)  ;;  %v367_v10 = vld [vmem:[%s3585_s1 + $0x38] sm:$0xff] (!%p162_p10)  ;;  %v368_v14 = vld [vmem:[%s3585_s1 + $0x40] sm:$0xff] (!%p162_p10)  ;;  %s2619_s10 = smul.u32 (!%p162_p10), 1280, %s186_s9  ;;  %s3538_s28 = scalar_lea.sflag (!%p162_p10), [#allocation3], %s186_s9 }
  0x11   : > { %2588 = vmatprep.subr.bf16.mxu0 (!%p162_p10), %v2587_v3  ;;  %2607 = vmatprep.subr.bf16.mxu1 (!%p162_p10), %v2587_v3  ;;  %v2599_v13 = vpack.c.bf16 (!%p162_p10), %v367_v10, %v366_v9  ;;  %v369_v15 = vld [vmem:[%s3585_s1 + $0x48] sm:$0xff] (!%p162_p10)  ;;  %v370_v17 = vld [vmem:[%s3585_s1 + $0x50] sm:$0x1] (!%p162_p10)  ;;  %s2621_s21 = smul.u32 (!%p162_p10), 20480, %s2749_s15  ;;  %s2759_s30 = smov (!%p162_p10), [#allocation2]  }
  0x12   : > { %2590 = vmatpush3.bf16.msra.mxu0 (!%p162_p10), %v2587_v3  ;;  %2613 = vmatpush3.bf16.msra.mxu1 (!%p162_p10), %v2587_v3  ;;  %v2603_v16 = vpack.c.bf16 (!%p162_p10), %v369_v15, %v368_v14  ;;  %s3209_s19 = scalar_lea.vmem (!%p162_p10), [#allocation2], %s2619_s10  ;;  %s2683_s4 = sshll.u32 (!%p162_p10), %s2759_s30, 4  ;;  %s2684_s4 = int_to_ptr.vmem [resolvable:$false] %s2683_s4 }
  0x13   : > { %2592 = vmatprep.subr.bf16.mxu0 (!%p162_p10), %v2591_v5  ;;  %2608 = vmatprep.subr.bf16.mxu1 (!%p162_p10), %v2591_v5  ;;  %s1904_s23 = sshll.u32 (!%p162_p10), %s3209_s19, 4  ;;  %s3526_s27 = scalar_lea.hbm (!%p162_p10), %s3587_s3, %s2621_s21  ;;  %s3528_s23 = int_to_ptr.vmem [resolvable:$true] %s1904_s23 }
  0x14   : > { %s2685_s5 = scalar_lea.vmem (!%p162_p10), %s2684_s4, 40960  ;;  %p2686_p1 = scmp.lt.s32.totalorder (!%p162_p10), %s3528_s23, %s2684_s4 }
  0x16   : > { %s191_s11 = scalar_select %p190_p11, %s2749_s15, 1  ;;  %2594 = vmatpush3.bf16.msra.mxu0 %v2591_v5  ;;  %2614 = vmatpush3.bf16.msra.mxu1 %v2591_v5 }
  0x17   : > { %2596 = vmatprep.subr.bf16.mxu0 %v2595_v8  ;;  %2609 = vmatprep.subr.bf16.mxu1 %v2595_v8 }
  0x18   : > { %s2620_s18 = smul.u32 1280, %s191_s11 }
  0x1a   : > { %s2866_s29 = scalar_lea.vmem %s3584_s0, %s2620_s18  ;;  %2598 = vmatpush3.bf16.msra.mxu0 %v2595_v8  ;;  %2615 = vmatpush3.bf16.msra.mxu1 %v2595_v8 }
  0x1b   : > { %v200_v11 = vld [vmem:[%s2866_s29] sm:$0xff]  ;;  %2600 = vmatprep.subr.bf16.mxu0 %v2599_v13  ;;  %2610 = vmatprep.subr.bf16.mxu1 %v2599_v13  ;;  %v201_v18 = vld [vmem:[%s2866_s29 + $0x8] sm:$0xff]  ;;  %v202_v20 = vld [vmem:[%s2866_s29 + $0x10] sm:$0xff] }
  0x1c   : > { %v280_v12 = vld [vmem:[%s2866_s29 + $0x280] sm:$0xff]  ;;  %2347 = vmatprep.mubr.msk.f32.mxu0 %vm378_vm0, %v200_v11  ;;  %v281_v19 = vld [vmem:[%s2866_s29 + $0x288] sm:$0xff]  ;;  %v282_v21 = vld [vmem:[%s2866_s29 + $0x290] sm:$0xff] }
  0x1d   : > { %2467 = vmatprep.mubr.msk.f32.mxu1 %vm378_vm0, %v280_v12  ;;  %v203_v22 = vld [vmem:[%s2866_s29 + $0x18] sm:$0xff]  ;;  %v204_v24 = vld [vmem:[%s2866_s29 + $0x20] sm:$0xff]  ;;  %v205_v26 = vld [vmem:[%s2866_s29 + $0x28] sm:$0xff] }
  0x1e   : > { %2602 = vmatpush3.bf16.msra.mxu0 %v2599_v13  ;;  %2616 = vmatpush3.bf16.msra.mxu1 %v2599_v13  ;;  %v283_v23 = vld [vmem:[%s2866_s29 + $0x298] sm:$0xff]  ;;  %v284_v25 = vld [vmem:[%s2866_s29 + $0x2a0] sm:$0xff]  ;;  %v285_v27 = vld [vmem:[%s2866_s29 + $0x2a8] sm:$0xff] }
  0x1f   : > { %2604 = vmatprep.subr.bf16.mxu0 %v2603_v16  ;;  %2611 = vmatprep.subr.bf16.mxu1 %v2603_v16  ;;  %v206_v28 = vld [vmem:[%s2866_s29 + $0x30] sm:$0xff]  ;;  %v207_v30 = vld [vmem:[%s2866_s29 + $0x38] sm:$0xff]  ;;  %v208_v32 = vld [vmem:[%s2866_s29 + $0x40] sm:$0xff] }
  0x20   : > { %v286_v29 = vld [vmem:[%s2866_s29 + $0x2b0] sm:$0xff]  ;;  %v287_v31 = vld [vmem:[%s2866_s29 + $0x2b8] sm:$0xff]  ;;  %v288_v33 = vld [vmem:[%s2866_s29 + $0x2c0] sm:$0xff] }
  0x21   : > { %v209_v34 = vld [vmem:[%s2866_s29 + $0x48] sm:$0xff]  ;;  %v210_v36 = vld [vmem:[%s2866_s29 + $0x50] sm:$0xff]  ;;  %v211_v38 = vld [vmem:[%s2866_s29 + $0x58] sm:$0xff] }
  0x22   : > { %2606 = vmatpush3.bf16.msra.mxu0 %v2603_v16  ;;  %2617 = vmatpush3.bf16.msra.mxu1 %v2603_v16  ;;  %v289_v35 = vld [vmem:[%s2866_s29 + $0x2c8] sm:$0xff]  ;;  %v290_v37 = vld [vmem:[%s2866_s29 + $0x2d0] sm:$0xff]  ;;  %v291_v39 = vld [vmem:[%s2866_s29 + $0x2d8] sm:$0xff] }
  0x23   : > { %2345 = vmatprep.subr.msk.mxu0 %vm859_vm1, %v370_v17  ;;  %2612 = vmatprep.subr.msk.mxu1 %vm859_vm1, %v370_v17  ;;  %v212_v40 = vld [vmem:[%s2866_s29 + $0x60] sm:$0xff]  ;;  %v213_v42 = vld [vmem:[%s2866_s29 + $0x68] sm:$0xff]  ;;  %v214_v44 = vld [vmem:[%s2866_s29 + $0x70] sm:$0xff] }
  0x24   : > { %v292_v41 = vld [vmem:[%s2866_s29 + $0x2e0] sm:$0xff]  ;;  %v293_v43 = vld [vmem:[%s2866_s29 + $0x2e8] sm:$0xff]  ;;  %v294_v45 = vld [vmem:[%s2866_s29 + $0x2f0] sm:$0xff] }
  0x25   : > { %v215_v46 = vld [vmem:[%s2866_s29 + $0x78] sm:$0xff]  ;;  %v216_v48 = vld [vmem:[%s2866_s29 + $0x80] sm:$0xff]  ;;  %v217_v50 = vld [vmem:[%s2866_s29 + $0x88] sm:$0xff] }
  0x26   : > { %2346 = vmatpush3.msk.msra.mxu0 %vm859_vm1, %v370_v17  ;;  %2618 = vmatpush3.msk.msra.mxu1 %vm859_vm1, %v370_v17  ;;  %v295_v47 = vld [vmem:[%s2866_s29 + $0x2f8] sm:$0xff]  ;;  %v296_v49 = vld [vmem:[%s2866_s29 + $0x300] sm:$0xff]  ;;  %v297_v51 = vld [vmem:[%s2866_s29 + $0x308] sm:$0xff] }
  0x27   : > { %2348 = vmatmul.mubr.msk.f32.vlgmr.msra.gmra.mrb[0].mxu0 %vm378_vm0, %v201_v18  ;;  %2468 = vmatmul.mubr.msk.f32.vlgmr.msra.gmra.mrb[0].mxu1 %vm378_vm0, %v281_v19  ;;  %v218_v52 = vld [vmem:[%s2866_s29 + $0x90] sm:$0xff]  ;;  %v219_v54 = vld [vmem:[%s2866_s29 + $0x98] sm:$0xff]  ;;  %v220_v56 = vld [vmem:[%s2866_s29 + $0xa0] sm:$0xff] }
  0x28   : > { %2350 = vmatprep.mubr.msk.f32.mxu0 %vm378_vm0, %v202_v20  ;;  %2470 = vmatprep.mubr.msk.f32.mxu1 %vm378_vm0, %v282_v21  ;;  %v298_v53 = vld [vmem:[%s2866_s29 + $0x310] sm:$0xff]  ;;  %v299_v55 = vld [vmem:[%s2866_s29 + $0x318] sm:$0xff]  ;;  %v300_v57 = vld [vmem:[%s2866_s29 + $0x320] sm:$0xff] }
  0x29   : > { %v221_v58 = vld [vmem:[%s2866_s29 + $0xa8] sm:$0xff]  ;;  %v222_v60 = vld [vmem:[%s2866_s29 + $0xb0] sm:$0xff]  ;;  %v223_v62 = vld [vmem:[%s2866_s29 + $0xb8] sm:$0xff] }
  0x2a   : > { %v301_v59 = vld [vmem:[%s2866_s29 + $0x328] sm:$0xff]  ;;  %v302_v61 = vld [vmem:[%s2866_s29 + $0x330] sm:$0xff]  ;;  %v303_v63 = vld [vmem:[%s2866_s29 + $0x338] sm:$0xff] }
  0x2b   : > { %2351 = vmatmul.mubr.msk.f32.gmra.mrb[2].mxu0 %vm378_vm0, %v203_v22  ;;  %2471 = vmatmul.mubr.msk.f32.gmra.mrb[2].mxu1 %vm378_vm0, %v283_v23  ;;  %v224_v0 = vld [vmem:[%s2866_s29 + $0xc0] sm:$0xff]  ;;  %v225_v2 = vld [vmem:[%s2866_s29 + $0xc8] sm:$0xff]  ;;  %v226_v4 = vld [vmem:[%s2866_s29 + $0xd0] sm:$0xff] }
  0x2c   : > { %2353 = vmatprep.mubr.msk.f32.mxu0 %vm378_vm0, %v204_v24  ;;  %2473 = vmatprep.mubr.msk.f32.mxu1 %vm378_vm0, %v284_v25  ;;  %v304_v1 = vld [vmem:[%s2866_s29 + $0x340] sm:$0xff]  ;;  %v305_v3 = vld [vmem:[%s2866_s29 + $0x348] sm:$0xff]  ;;  %v306_v5 = vld [vmem:[%s2866_s29 + $0x350] sm:$0xff] }
  0x2d   : > { %v227_v6 = vld [vmem:[%s2866_s29 + $0xd8] sm:$0xff]  ;;  %v228_v8 = vld [vmem:[%s2866_s29 + $0xe0] sm:$0xff]  ;;  %v229_v10 = vld [vmem:[%s2866_s29 + $0xe8] sm:$0xff] }
  0x2e   : > { %v307_v7 = vld [vmem:[%s2866_s29 + $0x358] sm:$0xff]  ;;  %v308_v9 = vld [vmem:[%s2866_s29 + $0x360] sm:$0xff]  ;;  %v309_v11 = vld [vmem:[%s2866_s29 + $0x368] sm:$0xff] }
  0x2f   : > { %2354 = vmatmul.mubr.msk.f32.gmra.mrb[4].mxu0 %vm378_vm0, %v205_v26  ;;  %2474 = vmatmul.mubr.msk.f32.gmra.mrb[4].mxu1 %vm378_vm0, %v285_v27  ;;  %v230_v12 = vld [vmem:[%s2866_s29 + $0xf0] sm:$0xff]  ;;  %v231_v14 = vld [vmem:[%s2866_s29 + $0xf8] sm:$0xff]  ;;  %v232_v16 = vld [vmem:[%s2866_s29 + $0x100] sm:$0xff] }
  0x30   : > { %2356 = vmatprep.mubr.msk.f32.mxu0 %vm378_vm0, %v206_v28  ;;  %2476 = vmatprep.mubr.msk.f32.mxu1 %vm378_vm0, %v286_v29  ;;  %v310_v13 = vld [vmem:[%s2866_s29 + $0x370] sm:$0xff]  ;;  %v311_v15 = vld [vmem:[%s2866_s29 + $0x378] sm:$0xff]  ;;  %v312_v17 = vld [vmem:[%s2866_s29 + $0x380] sm:$0xff] }
  0x31   : > { %v233_v18 = vld [vmem:[%s2866_s29 + $0x108] sm:$0xff]  ;;  %v234_v20 = vld [vmem:[%s2866_s29 + $0x110] sm:$0xff]  ;;  %v235_v22 = vld [vmem:[%s2866_s29 + $0x118] sm:$0xff] }
  0x32   : > { %v313_v19 = vld [vmem:[%s2866_s29 + $0x388] sm:$0xff]  ;;  %v314_v21 = vld [vmem:[%s2866_s29 + $0x390] sm:$0xff]  ;;  %v315_v23 = vld [vmem:[%s2866_s29 + $0x398] sm:$0xff] }
  0x33   : > { %2357 = vmatmul.mubr.msk.f32.gmra.mrb[6].mxu0 %vm378_vm0, %v207_v30  ;;  %2477 = vmatmul.mubr.msk.f32.gmra.mrb[6].mxu1 %vm378_vm0, %v287_v31  ;;  %v236_v24 = vld [vmem:[%s2866_s29 + $0x120] sm:$0xff]  ;;  %v237_v26 = vld [vmem:[%s2866_s29 + $0x128] sm:$0xff]  ;;  %v238_v28 = vld [vmem:[%s2866_s29 + $0x130] sm:$0xff] }
  0x34   : > { %2359 = vmatprep.mubr.msk.f32.mxu0 %vm378_vm0, %v208_v32  ;;  %2479 = vmatprep.mubr.msk.f32.mxu1 %vm378_vm0, %v288_v33  ;;  %v316_v25 = vld [vmem:[%s2866_s29 + $0x3a0] sm:$0xff]  ;;  %v317_v27 = vld [vmem:[%s2866_s29 + $0x3a8] sm:$0xff]  ;;  %v318_v29 = vld [vmem:[%s2866_s29 + $0x3b0] sm:$0xff] }
  0x35   : > { %v239_v30 = vld [vmem:[%s2866_s29 + $0x138] sm:$0xff]  ;;  %v240_v32 = vld [vmem:[%s2866_s29 + $0x140] sm:$0xff] }
  0x36   : > { %v319_v31 = vld [vmem:[%s2866_s29 + $0x3b8] sm:$0xff]  ;;  %v320_v33 = vld [vmem:[%s2866_s29 + $0x3c0] sm:$0xff] }
  0x37   : > { %2360 = vmatmul.mubr.msk.f32.gmra.mrb[8].mxu0 %vm378_vm0, %v209_v34  ;;  %2480 = vmatmul.mubr.msk.f32.gmra.mrb[8].mxu1 %vm378_vm0, %v289_v35  ;;  %v241_v34 = vld [vmem:[%s2866_s29 + $0x148] sm:$0xff] }
  0x38   : > { %2362 = vmatprep.mubr.msk.f32.mxu0 %vm378_vm0, %v210_v36  ;;  %2482 = vmatprep.mubr.msk.f32.mxu1 %vm378_vm0, %v290_v37  ;;  %v321_v35 = vld [vmem:[%s2866_s29 + $0x3c8] sm:$0xff]  ;;  %v242_v36 = vld [vmem:[%s2866_s29 + $0x150] sm:$0xff] }
  0x39   : > { %v322_v37 = vld [vmem:[%s2866_s29 + $0x3d0] sm:$0xff] }
  0x3b   : > { %2363 = vmatmul.mubr.msk.f32.gmra.mrb[10].mxu0 %vm378_vm0, %v211_v38  ;;  %2483 = vmatmul.mubr.msk.f32.gmra.mrb[10].mxu1 %vm378_vm0, %v291_v39  ;;  %v243_v38 = vld [vmem:[%s2866_s29 + $0x158] sm:$0xff] }
  0x3c   : > { %2365 = vmatprep.mubr.msk.f32.mxu0 %vm378_vm0, %v212_v40  ;;  %2485 = vmatprep.mubr.msk.f32.mxu1 %vm378_vm0, %v292_v41  ;;  %v323_v39 = vld [vmem:[%s2866_s29 + $0x3d8] sm:$0xff]  ;;  %v244_v40 = vld [vmem:[%s2866_s29 + $0x160] sm:$0xff] }
  0x3d   : > { %v324_v41 = vld [vmem:[%s2866_s29 + $0x3e0] sm:$0xff] }
  0x3f   : > { %2366 = vmatmul.mubr.msk.f32.gmra.mrb[12].mxu0 %vm378_vm0, %v213_v42  ;;  %2486 = vmatmul.mubr.msk.f32.gmra.mrb[12].mxu1 %vm378_vm0, %v293_v43  ;;  %v245_v42 = vld [vmem:[%s2866_s29 + $0x168] sm:$0xff] }
  0x40   : > { %2368 = vmatprep.mubr.msk.f32.mxu0 %vm378_vm0, %v214_v44  ;;  %2488 = vmatprep.mubr.msk.f32.mxu1 %vm378_vm0, %v294_v45  ;;  %v325_v43 = vld [vmem:[%s2866_s29 + $0x3e8] sm:$0xff]  ;;  %v246_v44 = vld [vmem:[%s2866_s29 + $0x170] sm:$0xff] }
  0x41   : > { %v326_v45 = vld [vmem:[%s2866_s29 + $0x3f0] sm:$0xff] }
  0x43   : > { %2369 = vmatmul.mubr.msk.f32.gmra.mrb[14].mxu0 %vm378_vm0, %v215_v46  ;;  %2489 = vmatmul.mubr.msk.f32.gmra.mrb[14].mxu1 %vm378_vm0, %v295_v47  ;;  %v247_v46 = vld [vmem:[%s2866_s29 + $0x178] sm:$0xff] }
  0x44   : > { %2371 = vmatprep.mubr.msk.f32.mxu0 %vm378_vm0, %v216_v48  ;;  %2491 = vmatprep.mubr.msk.f32.mxu1 %vm378_vm0, %v296_v49  ;;  %v327_v47 = vld [vmem:[%s2866_s29 + $0x3f8] sm:$0xff]  ;;  %v248_v48 = vld [vmem:[%s2866_s29 + $0x180] sm:$0xff] }
  0x45   : > { %v328_v49 = vld [vmem:[%s2866_s29 + $0x400] sm:$0xff] }
  0x47   : > { %2372 = vmatmul.mubr.msk.f32.gmra.mrb[16].mxu0 %vm378_vm0, %v217_v50  ;;  %2492 = vmatmul.mubr.msk.f32.gmra.mrb[16].mxu1 %vm378_vm0, %v297_v51  ;;  %v249_v50 = vld [vmem:[%s2866_s29 + $0x188] sm:$0xff] }
  0x48   : > { %2374 = vmatprep.mubr.msk.f32.mxu0 %vm378_vm0, %v218_v52  ;;  %2494 = vmatprep.mubr.msk.f32.mxu1 %vm378_vm0, %v298_v53  ;;  %v329_v51 = vld [vmem:[%s2866_s29 + $0x408] sm:$0xff]  ;;  %v250_v52 = vld [vmem:[%s2866_s29 + $0x190] sm:$0xff] }
  0x49   : > { %v330_v53 = vld [vmem:[%s2866_s29 + $0x410] sm:$0xff] }
  0x4b   : > { %2375 = vmatmul.mubr.msk.f32.gmra.mrb[18].mxu0 %vm378_vm0, %v219_v54  ;;  %2495 = vmatmul.mubr.msk.f32.gmra.mrb[18].mxu1 %vm378_vm0, %v299_v55  ;;  %v251_v54 = vld [vmem:[%s2866_s29 + $0x198] sm:$0xff] }
  0x4c   : > { %2377 = vmatprep.mubr.msk.f32.mxu0 %vm378_vm0, %v220_v56  ;;  %2497 = vmatprep.mubr.msk.f32.mxu1 %vm378_vm0, %v300_v57  ;;  %v331_v55 = vld [vmem:[%s2866_s29 + $0x418] sm:$0xff]  ;;  %v252_v56 = vld [vmem:[%s2866_s29 + $0x1a0] sm:$0xff] }
  0x4d   : > { %v332_v57 = vld [vmem:[%s2866_s29 + $0x420] sm:$0xff] }
  0x4f   : > { %2378 = vmatmul.mubr.msk.f32.gmra.mrb[20].mxu0 %vm378_vm0, %v221_v58  ;;  %2498 = vmatmul.mubr.msk.f32.gmra.mrb[20].mxu1 %vm378_vm0, %v301_v59  ;;  %v253_v58 = vld [vmem:[%s2866_s29 + $0x1a8] sm:$0xff] }
  0x50   : > { %2380 = vmatprep.mubr.msk.f32.mxu0 %vm378_vm0, %v222_v60  ;;  %2500 = vmatprep.mubr.msk.f32.mxu1 %vm378_vm0, %v302_v61  ;;  %v333_v59 = vld [vmem:[%s2866_s29 + $0x428] sm:$0xff]  ;;  %v254_v60 = vld [vmem:[%s2866_s29 + $0x1b0] sm:$0xff] }
  0x51   : > { %v334_v61 = vld [vmem:[%s2866_s29 + $0x430] sm:$0xff] }
  0x53   : > { %2381 = vmatmul.mubr.msk.f32.gmra.mrb[22].mxu0 %vm378_vm0, %v223_v62  ;;  %2501 = vmatmul.mubr.msk.f32.gmra.mrb[22].mxu1 %vm378_vm0, %v303_v63  ;;  %v255_v62 = vld [vmem:[%s2866_s29 + $0x1b8] sm:$0xff] }
  0x54   : > { %2383 = vmatprep.mubr.msk.f32.mxu0 %vm378_vm0, %v224_v0  ;;  %2503 = vmatprep.mubr.msk.f32.mxu1 %vm378_vm0, %v304_v1  ;;  %v335_v63 = vld [vmem:[%s2866_s29 + $0x438] sm:$0xff]  ;;  %v256_v0 = vld [vmem:[%s2866_s29 + $0x1c0] sm:$0xff] }
  0x55   : > { %v336_v1 = vld [vmem:[%s2866_s29 + $0x440] sm:$0xff] }
  0x57   : > { %2384 = vmatmul.mubr.msk.f32.gmra.mrb[24].mxu0 %vm378_vm0, %v225_v2  ;;  %2504 = vmatmul.mubr.msk.f32.gmra.mrb[24].mxu1 %vm378_vm0, %v305_v3  ;;  %v257_v2 = vld [vmem:[%s2866_s29 + $0x1c8] sm:$0xff] }
  0x58   : > { %2386 = vmatprep.mubr.msk.f32.mxu0 %vm378_vm0, %v226_v4  ;;  %2506 = vmatprep.mubr.msk.f32.mxu1 %vm378_vm0, %v306_v5  ;;  %v337_v3 = vld [vmem:[%s2866_s29 + $0x448] sm:$0xff]  ;;  %v258_v4 = vld [vmem:[%s2866_s29 + $0x1d0] sm:$0xff] }
  0x59   : > { %v338_v5 = vld [vmem:[%s2866_s29 + $0x450] sm:$0xff] }
  0x5b   : > { %2387 = vmatmul.mubr.msk.f32.gmra.mrb[26].mxu0 %vm378_vm0, %v227_v6  ;;  %2507 = vmatmul.mubr.msk.f32.gmra.mrb[26].mxu1 %vm378_vm0, %v307_v7  ;;  %v259_v6 = vld [vmem:[%s2866_s29 + $0x1d8] sm:$0xff] }
  0x5c   : > { %2389 = vmatprep.mubr.msk.f32.mxu0 %vm378_vm0, %v228_v8  ;;  %2509 = vmatprep.mubr.msk.f32.mxu1 %vm378_vm0, %v308_v9  ;;  %v339_v7 = vld [vmem:[%s2866_s29 + $0x458] sm:$0xff]  ;;  %v260_v8 = vld [vmem:[%s2866_s29 + $0x1e0] sm:$0xff] }
  0x5d   : > { %v340_v9 = vld [vmem:[%s2866_s29 + $0x460] sm:$0xff] }
  0x5f   : > { %2390 = vmatmul.mubr.msk.f32.gmra.mrb[28].mxu0 %vm378_vm0, %v229_v10  ;;  %2510 = vmatmul.mubr.msk.f32.gmra.mrb[28].mxu1 %vm378_vm0, %v309_v11  ;;  %v261_v10 = vld [vmem:[%s2866_s29 + $0x1e8] sm:$0xff] }
  0x60   : > { %2392 = vmatprep.mubr.msk.f32.mxu0 %vm378_vm0, %v230_v12  ;;  %2512 = vmatprep.mubr.msk.f32.mxu1 %vm378_vm0, %v310_v13  ;;  %v341_v11 = vld [vmem:[%s2866_s29 + $0x468] sm:$0xff]  ;;  %v262_v12 = vld [vmem:[%s2866_s29 + $0x1f0] sm:$0xff] }
  0x61   : > { %v342_v13 = vld [vmem:[%s2866_s29 + $0x470] sm:$0xff] }
  0x63   : > { %2393 = vmatmul.mubr.msk.f32.gmra.mrb[30].mxu0 %vm378_vm0, %v231_v14  ;;  %2513 = vmatmul.mubr.msk.f32.gmra.mrb[30].mxu1 %vm378_vm0, %v311_v15  ;;  %v263_v14 = vld [vmem:[%s2866_s29 + $0x1f8] sm:$0xff] }
  0x64   : > { %2395 = vmatprep.mubr.msk.f32.mxu0 %vm378_vm0, %v232_v16  ;;  %2515 = vmatprep.mubr.msk.f32.mxu1 %vm378_vm0, %v312_v17  ;;  %v343_v15 = vld [vmem:[%s2866_s29 + $0x478] sm:$0xff]  ;;  %v264_v16 = vld [vmem:[%s2866_s29 + $0x200] sm:$0xff] }
  0x65   : > { %v344_v17 = vld [vmem:[%s2866_s29 + $0x480] sm:$0xff] }
  0x67   : > { %2396 = vmatmul.mubr.msk.f32.gmra.mrb[32].mxu0 %vm378_vm0, %v233_v18  ;;  %2516 = vmatmul.mubr.msk.f32.gmra.mrb[32].mxu1 %vm378_vm0, %v313_v19  ;;  %v265_v18 = vld [vmem:[%s2866_s29 + $0x208] sm:$0xff] }
  0x68   : > { %2398 = vmatprep.mubr.msk.f32.mxu0 %vm378_vm0, %v234_v20  ;;  %2518 = vmatprep.mubr.msk.f32.mxu1 %vm378_vm0, %v314_v21  ;;  %v345_v19 = vld [vmem:[%s2866_s29 + $0x488] sm:$0xff]  ;;  %v266_v20 = vld [vmem:[%s2866_s29 + $0x210] sm:$0xff] }
  0x69   : > { %v346_v21 = vld [vmem:[%s2866_s29 + $0x490] sm:$0xff] }
  0x6b   : > { %2399 = vmatmul.mubr.msk.f32.gmra.mrb[34].mxu0 %vm378_vm0, %v235_v22  ;;  %2519 = vmatmul.mubr.msk.f32.gmra.mrb[34].mxu1 %vm378_vm0, %v315_v23  ;;  %v267_v22 = vld [vmem:[%s2866_s29 + $0x218] sm:$0xff] }
  0x6c   : > { %2401 = vmatprep.mubr.msk.f32.mxu0 %vm378_vm0, %v236_v24  ;;  %2521 = vmatprep.mubr.msk.f32.mxu1 %vm378_vm0, %v316_v25  ;;  %v347_v23 = vld [vmem:[%s2866_s29 + $0x498] sm:$0xff]  ;;  %v268_v24 = vld [vmem:[%s2866_s29 + $0x220] sm:$0xff] }
  0x6d   : > { %v348_v25 = vld [vmem:[%s2866_s29 + $0x4a0] sm:$0xff] }
  0x6f   : > { %2402 = vmatmul.mubr.msk.f32.gmra.mrb[36].mxu0 %vm378_vm0, %v237_v26  ;;  %2522 = vmatmul.mubr.msk.f32.gmra.mrb[36].mxu1 %vm378_vm0, %v317_v27  ;;  %v269_v26 = vld [vmem:[%s2866_s29 + $0x228] sm:$0xff] }
  0x70   : > { %2404 = vmatprep.mubr.msk.f32.mxu0 %vm378_vm0, %v238_v28  ;;  %2524 = vmatprep.mubr.msk.f32.mxu1 %vm378_vm0, %v318_v29  ;;  %v349_v27 = vld [vmem:[%s2866_s29 + $0x4a8] sm:$0xff]  ;;  %v270_v28 = vld [vmem:[%s2866_s29 + $0x230] sm:$0xff] }
  0x71   : > { %v350_v29 = vld [vmem:[%s2866_s29 + $0x4b0] sm:$0xff] }
  0x73   : > { %2405 = vmatmul.mubr.msk.f32.gmra.mrb[38].mxu0 %vm378_vm0, %v239_v30  ;;  %2525 = vmatmul.mubr.msk.f32.gmra.mrb[38].mxu1 %vm378_vm0, %v319_v31  ;;  %v271_v30 = vld [vmem:[%s2866_s29 + $0x238] sm:$0xff] }
  0x74   : > { %2407 = vmatprep.mubr.msk.f32.mxu0 %vm378_vm0, %v240_v32  ;;  %2527 = vmatprep.mubr.msk.f32.mxu1 %vm378_vm0, %v320_v33  ;;  %v351_v31 = vld [vmem:[%s2866_s29 + $0x4b8] sm:$0xff]  ;;  %v272_v32 = vld [vmem:[%s2866_s29 + $0x240] sm:$0xff] }
  0x75   : > { %v352_v33 = vld [vmem:[%s2866_s29 + $0x4c0] sm:$0xff] }
  0x77   : > { %2408 = vmatmul.mubr.msk.f32.gmra.mrb[40].mxu0 %vm378_vm0, %v241_v34  ;;  %2528 = vmatmul.mubr.msk.f32.gmra.mrb[40].mxu1 %vm378_vm0, %v321_v35  ;;  %v273_v34 = vld [vmem:[%s2866_s29 + $0x248] sm:$0xff] }
  0x78   : > { %2410 = vmatprep.mubr.msk.f32.mxu0 %vm378_vm0, %v242_v36  ;;  %2530 = vmatprep.mubr.msk.f32.mxu1 %vm378_vm0, %v322_v37  ;;  %v353_v35 = vld [vmem:[%s2866_s29 + $0x4c8] sm:$0xff]  ;;  %v274_v36 = vld [vmem:[%s2866_s29 + $0x250] sm:$0xff] }
  0x79   : > { %v354_v37 = vld [vmem:[%s2866_s29 + $0x4d0] sm:$0xff] }
  0x7b   : > { %2411 = vmatmul.mubr.msk.f32.gmra.mrb[42].mxu0 %vm378_vm0, %v243_v38  ;;  %2531 = vmatmul.mubr.msk.f32.gmra.mrb[42].mxu1 %vm378_vm0, %v323_v39  ;;  %v275_v38 = vld [vmem:[%s2866_s29 + $0x258] sm:$0xff] }
  0x7c   : > { %2413 = vmatprep.mubr.msk.f32.mxu0 %vm378_vm0, %v244_v40  ;;  %2533 = vmatprep.mubr.msk.f32.mxu1 %vm378_vm0, %v324_v41  ;;  %v355_v39 = vld [vmem:[%s2866_s29 + $0x4d8] sm:$0xff]  ;;  %v276_v40 = vld [vmem:[%s2866_s29 + $0x260] sm:$0xff] }
  0x7d   : > { %v356_v41 = vld [vmem:[%s2866_s29 + $0x4e0] sm:$0xff] }
  0x7f   : > { %2414 = vmatmul.mubr.msk.f32.gmra.mrb[44].mxu0 %vm378_vm0, %v245_v42  ;;  %2534 = vmatmul.mubr.msk.f32.gmra.mrb[44].mxu1 %vm378_vm0, %v325_v43  ;;  %v277_v42 = vld [vmem:[%s2866_s29 + $0x268] sm:$0xff] }
  0x80   : > { %2416 = vmatprep.mubr.msk.f32.mxu0 %vm378_vm0, %v246_v44  ;;  %2536 = vmatprep.mubr.msk.f32.mxu1 %vm378_vm0, %v326_v45  ;;  %v357_v43 = vld [vmem:[%s2866_s29 + $0x4e8] sm:$0xff]  ;;  %v278_v44 = vld [vmem:[%s2866_s29 + $0x270] sm:$0xff] }
  0x81   : > { %v358_v45 = vld [vmem:[%s2866_s29 + $0x4f0] sm:$0xff] }
  0x83   : > { %2417 = vmatmul.mubr.msk.f32.gmra.mrb[46].mxu0 %vm378_vm0, %v247_v46  ;;  %2537 = vmatmul.mubr.msk.f32.gmra.mrb[46].mxu1 %vm378_vm0, %v327_v47  ;;  %v279_v46 = vld [vmem:[%s2866_s29 + $0x278] sm:$0xff] }
  0x84   : > { %2419 = vmatprep.mubr.msk.f32.mxu0 %vm378_vm0, %v248_v48  ;;  %2539 = vmatprep.mubr.msk.f32.mxu1 %vm378_vm0, %v328_v49  ;;  %v359_v47 = vld [vmem:[%s2866_s29 + $0x4f8] sm:$0xff]  ;;  %v3203_v48 = vld [vmem:[%s3586_s2] ss:$0 sm:$0xff]  ;;  %s2679_s29 = scalar_lea.vmem %s3528_s23, 20480 }
  0x85   : > { %p2680_p12 = scmp.ne.s32.totalorder %s3528_s23, %s2679_s29  ;;  %p2687_p2 = scmp.lt.s32.totalorder %s2685_s5, %s2679_s29 }
  0x87   : > { %2420 = vmatmul.mubr.msk.f32.gmra.mrb[48].mxu0 %vm378_vm0, %v249_v50  ;;  %2540 = vmatmul.mubr.msk.f32.gmra.mrb[48].mxu1 %vm378_vm0, %v329_v51  ;;  %p2681_p13 = pnand %p2680_p12, %p2822_p4  ;;  %p2688_p3 = por %p2687_p2, %p2686_p1 }
  0x88   : > { %2422 = vmatprep.mubr.msk.f32.mxu0 %vm378_vm0, %v250_v52  ;;  %2542 = vmatprep.mubr.msk.f32.mxu1 %vm378_vm0, %v330_v53 }
  0x89   : > { %p2682_p0 = pneg %p2681_p13 }
  0x8b   : > { %2423 = vmatmul.mubr.msk.f32.gmra.mrb[50].mxu0 %vm378_vm0, %v251_v54  ;;  %2543 = vmatmul.mubr.msk.f32.gmra.mrb[50].mxu1 %vm378_vm0, %v331_v55  ;;  %p2689_p5 = pnand %p2688_p3, %p2682_p0 }
  0x8c   : > { %2425 = vmatprep.mubr.msk.f32.mxu0 %vm378_vm0, %v252_v56  ;;  %2545 = vmatprep.mubr.msk.f32.mxu1 %vm378_vm0, %v332_v57 }
  0x8f   : > { %2426 = vmatmul.mubr.msk.f32.gmra.mrb[52].mxu0 %vm378_vm0, %v253_v58  ;;  %2546 = vmatmul.mubr.msk.f32.gmra.mrb[52].mxu1 %vm378_vm0, %v333_v59 }
  0x90   : > { %2428 = vmatprep.mubr.msk.f32.mxu0 %vm378_vm0, %v254_v60  ;;  %2548 = vmatprep.mubr.msk.f32.mxu1 %vm378_vm0, %v334_v61 }
  0x93   : > { %2429 = vmatmul.mubr.msk.f32.gmra.mrb[54].mxu0 %vm378_vm0, %v255_v62  ;;  %2549 = vmatmul.mubr.msk.f32.gmra.mrb[54].mxu1 %vm378_vm0, %v335_v63 }
  0x94   : > { %2431 = vmatprep.mubr.msk.f32.mxu0 %vm378_vm0, %v256_v0  ;;  %2551 = vmatprep.mubr.msk.f32.mxu1 %vm378_vm0, %v336_v1 }
  0x97   : > { %2432 = vmatmul.mubr.msk.f32.gmra.mrb[56].mxu0 %vm378_vm0, %v257_v2  ;;  %2552 = vmatmul.mubr.msk.f32.gmra.mrb[56].mxu1 %vm378_vm0, %v337_v3 }
  0x98   : > { %2434 = vmatprep.mubr.msk.f32.mxu0 %vm378_vm0, %v258_v4  ;;  %2554 = vmatprep.mubr.msk.f32.mxu1 %vm378_vm0, %v338_v5 }
  0x9b   : > { %2435 = vmatmul.mubr.msk.f32.gmra.mrb[58].mxu0 %vm378_vm0, %v259_v6  ;;  %2555 = vmatmul.mubr.msk.f32.gmra.mrb[58].mxu1 %vm378_vm0, %v339_v7 }
  0x9c   : > { %2437 = vmatprep.mubr.msk.f32.mxu0 %vm378_vm0, %v260_v8  ;;  %2557 = vmatprep.mubr.msk.f32.mxu1 %vm378_vm0, %v340_v9 }
  0x9f   : > { %2438 = vmatmul.mubr.msk.f32.gmra.mrb[60].mxu0 %vm378_vm0, %v261_v10  ;;  %2558 = vmatmul.mubr.msk.f32.gmra.mrb[60].mxu1 %vm378_vm0, %v341_v11 }
  0xa0   : > { %2440 = vmatprep.mubr.msk.f32.mxu0 %vm378_vm0, %v262_v12  ;;  %2560 = vmatprep.mubr.msk.f32.mxu1 %vm378_vm0, %v342_v13 }
  0xa3   : > { %2441 = vmatmul.mubr.msk.f32.gmra.mrb[62].mxu0 %vm378_vm0, %v263_v14  ;;  %2561 = vmatmul.mubr.msk.f32.gmra.mrb[62].mxu1 %vm378_vm0, %v343_v15 }
  0xa4   : > { %2443 = vmatprep.mubr.msk.f32.mxu0 %vm378_vm0, %v264_v16  ;;  %2563 = vmatprep.mubr.msk.f32.mxu1 %vm378_vm0, %v344_v17 }
  0xa7   : > { %2444 = vmatmul.mubr.msk.f32.gmra.mrb[64].mxu0 %vm378_vm0, %v265_v18  ;;  %2564 = vmatmul.mubr.msk.f32.gmra.mrb[64].mxu1 %vm378_vm0, %v345_v19 }
  0xa8   : > { %2446 = vmatprep.mubr.msk.f32.mxu0 %vm378_vm0, %v266_v20  ;;  %2566 = vmatprep.mubr.msk.f32.mxu1 %vm378_vm0, %v346_v21 }
  0xab   : > { %2447 = vmatmul.mubr.msk.f32.gmra.mrb[66].mxu0 %vm378_vm0, %v267_v22  ;;  %2567 = vmatmul.mubr.msk.f32.gmra.mrb[66].mxu1 %vm378_vm0, %v347_v23 }
  0xac   : > { %2449 = vmatprep.mubr.msk.f32.mxu0 %vm378_vm0, %v268_v24  ;;  %2569 = vmatprep.mubr.msk.f32.mxu1 %vm378_vm0, %v348_v25 }
  0xaf   : > { %2450 = vmatmul.mubr.msk.f32.gmra.mrb[68].mxu0 %vm378_vm0, %v269_v26  ;;  %2570 = vmatmul.mubr.msk.f32.gmra.mrb[68].mxu1 %vm378_vm0, %v349_v27 }
  0xb0   : > { %2452 = vmatprep.mubr.msk.f32.mxu0 %vm378_vm0, %v270_v28  ;;  %2572 = vmatprep.mubr.msk.f32.mxu1 %vm378_vm0, %v350_v29 }
  0xb3   : > { %2453 = vmatmul.mubr.msk.f32.gmra.mrb[70].mxu0 %vm378_vm0, %v271_v30  ;;  %2573 = vmatmul.mubr.msk.f32.gmra.mrb[70].mxu1 %vm378_vm0, %v351_v31 }
  0xb4   : > { %2455 = vmatprep.mubr.msk.f32.mxu0 %vm378_vm0, %v272_v32  ;;  %2575 = vmatprep.mubr.msk.f32.mxu1 %vm378_vm0, %v352_v33 }
  0xb7   : > { %2456 = vmatmul.mubr.msk.f32.gmra.mrb[72].mxu0 %vm378_vm0, %v273_v34  ;;  %2576 = vmatmul.mubr.msk.f32.gmra.mrb[72].mxu1 %vm378_vm0, %v353_v35 }
  0xb8   : > { %2458 = vmatprep.mubr.msk.f32.mxu0 %vm378_vm0, %v274_v36  ;;  %2578 = vmatprep.mubr.msk.f32.mxu1 %vm378_vm0, %v354_v37 }
  0xbb   : > { %2459 = vmatmul.mubr.msk.f32.gmra.mrb[74].mxu0 %vm378_vm0, %v275_v38  ;;  %2579 = vmatmul.mubr.msk.f32.gmra.mrb[74].mxu1 %vm378_vm0, %v355_v39 }
  0xbc   : > { %2461 = vmatprep.mubr.msk.f32.mxu0 %vm378_vm0, %v276_v40  ;;  %2581 = vmatprep.mubr.msk.f32.mxu1 %vm378_vm0, %v356_v41 }
  0xbf   : > { %2462 = vmatmul.mubr.msk.f32.gmra.mrb[76].mxu0 %vm378_vm0, %v277_v42  ;;  %2582 = vmatmul.mubr.msk.f32.gmra.mrb[76].mxu1 %vm378_vm0, %v357_v43 }
  0xc0   : > { %2464 = vmatprep.mubr.msk.f32.mxu0 %vm378_vm0, %v278_v44  ;;  %2584 = vmatprep.mubr.msk.f32.mxu1 %vm378_vm0, %v358_v45 }
  0xc3   : > { %2465 = vmatmul.mubr.msk.f32.gmra.mrb[78].mxu0 %vm378_vm0, %v279_v46  ;;  %2585 = vmatmul.mubr.msk.f32.gmra.mrb[78].mxu1 %vm378_vm0, %v359_v47 }
  0xfa   : > { %v2349_v49 = vpop.f32.mrb[0].mxu0  ;;  %v2469_v50 = vpop.f32.mrb[0].mxu1 }
  0xfb   : > { %v935_v51 = vadd.f32 %v2349_v49, %v3203_v48  ;;  %v1335_v52 = vadd.f32 %v2469_v50, %v3203_v48  ;;  %v929_v53 = vpop.f32.mrb[1].mxu0  ;;  %v1329_v54 = vpop.f32.mrb[1].mxu1 }
  0xfc   : > { %v930_v55 = vadd.f32 %v3203_v48, %v929_v53  ;;  %v1330_v56 = vadd.f32 %v3203_v48, %v1329_v54 }
  0xfd   : > { %1729 = vst [vmem:[%s3209_s19 + $0x8] sm:$0xff] %v935_v51  ;;  %1809 = vst [vmem:[%s3209_s19 + $0x288] sm:$0xff] %v1335_v52 }
  0xfe   : > { %1728 = vst [vmem:[%s3209_s19] sm:$0xff] %v930_v55  ;;  %1808 = vst [vmem:[%s3209_s19 + $0x280] sm:$0xff] %v1330_v56  ;;  %v2352_v57 = vpop.f32.mrb[2].mxu0  ;;  %v2472_v58 = vpop.f32.mrb[2].mxu1 }
  0xff   : > { %v945_v59 = vadd.f32 %v2352_v57, %v3203_v48  ;;  %v1345_v60 = vadd.f32 %v2472_v58, %v3203_v48  ;;  %v939_v61 = vpop.f32.mrb[3].mxu0  ;;  %v1339_v62 = vpop.f32.mrb[3].mxu1 }
 0x100   : > { %v940_v63 = vadd.f32 %v3203_v48, %v939_v61  ;;  %v1340_v0 = vadd.f32 %v3203_v48, %v1339_v62 }
 0x101   : > { %1731 = vst [vmem:[%s3209_s19 + $0x18] sm:$0xff] %v945_v59  ;;  %1811 = vst [vmem:[%s3209_s19 + $0x298] sm:$0xff] %v1345_v60 }
 0x102   : > { %1730 = vst [vmem:[%s3209_s19 + $0x10] sm:$0xff] %v940_v63  ;;  %1810 = vst [vmem:[%s3209_s19 + $0x290] sm:$0xff] %v1340_v0  ;;  %v2355_v1 = vpop.f32.mrb[4].mxu0  ;;  %v2475_v2 = vpop.f32.mrb[4].mxu1 }
 0x103   : > { %v955_v3 = vadd.f32 %v2355_v1, %v3203_v48  ;;  %v1355_v4 = vadd.f32 %v2475_v2, %v3203_v48  ;;  %v949_v5 = vpop.f32.mrb[5].mxu0  ;;  %v1349_v6 = vpop.f32.mrb[5].mxu1 }
 0x104   : > { %v950_v7 = vadd.f32 %v3203_v48, %v949_v5  ;;  %v1350_v8 = vadd.f32 %v3203_v48, %v1349_v6 }
 0x105   : > { %1733 = vst [vmem:[%s3209_s19 + $0x28] sm:$0xff] %v955_v3  ;;  %1813 = vst [vmem:[%s3209_s19 + $0x2a8] sm:$0xff] %v1355_v4 }
 0x106   : > { %1732 = vst [vmem:[%s3209_s19 + $0x20] sm:$0xff] %v950_v7  ;;  %1812 = vst [vmem:[%s3209_s19 + $0x2a0] sm:$0xff] %v1350_v8  ;;  %v2358_v9 = vpop.f32.mrb[6].mxu0  ;;  %v2478_v10 = vpop.f32.mrb[6].mxu1 }
 0x107   : > { %v965_v11 = vadd.f32 %v2358_v9, %v3203_v48  ;;  %v1365_v12 = vadd.f32 %v2478_v10, %v3203_v48  ;;  %v959_v13 = vpop.f32.mrb[7].mxu0  ;;  %v1359_v14 = vpop.f32.mrb[7].mxu1 }
 0x108   : > { %v960_v15 = vadd.f32 %v3203_v48, %v959_v13  ;;  %v1360_v16 = vadd.f32 %v3203_v48, %v1359_v14 }
 0x109   : > { %1735 = vst [vmem:[%s3209_s19 + $0x38] sm:$0xff] %v965_v11  ;;  %1815 = vst [vmem:[%s3209_s19 + $0x2b8] sm:$0xff] %v1365_v12 }
 0x10a   : > { %1734 = vst [vmem:[%s3209_s19 + $0x30] sm:$0xff] %v960_v15  ;;  %1814 = vst [vmem:[%s3209_s19 + $0x2b0] sm:$0xff] %v1360_v16  ;;  %v2361_v17 = vpop.f32.mrb[8].mxu0  ;;  %v2481_v18 = vpop.f32.mrb[8].mxu1 }
 0x10b   : > { %v975_v19 = vadd.f32 %v2361_v17, %v3203_v48  ;;  %v1375_v20 = vadd.f32 %v2481_v18, %v3203_v48  ;;  %v969_v21 = vpop.f32.mrb[9].mxu0  ;;  %v1369_v22 = vpop.f32.mrb[9].mxu1 }
 0x10c   : > { %v970_v23 = vadd.f32 %v3203_v48, %v969_v21  ;;  %v1370_v24 = vadd.f32 %v3203_v48, %v1369_v22 }
 0x10d   : > { %1737 = vst [vmem:[%s3209_s19 + $0x48] sm:$0xff] %v975_v19  ;;  %1817 = vst [vmem:[%s3209_s19 + $0x2c8] sm:$0xff] %v1375_v20 }
 0x10e   : > { %1736 = vst [vmem:[%s3209_s19 + $0x40] sm:$0xff] %v970_v23  ;;  %1816 = vst [vmem:[%s3209_s19 + $0x2c0] sm:$0xff] %v1370_v24  ;;  %v2364_v25 = vpop.f32.mrb[10].mxu0  ;;  %v2484_v26 = vpop.f32.mrb[10].mxu1 }
 0x10f   : > { %v985_v27 = vadd.f32 %v2364_v25, %v3203_v48  ;;  %v1385_v28 = vadd.f32 %v2484_v26, %v3203_v48  ;;  %v979_v29 = vpop.f32.mrb[11].mxu0  ;;  %v1379_v30 = vpop.f32.mrb[11].mxu1 }
 0x110   : > { %v980_v31 = vadd.f32 %v3203_v48, %v979_v29  ;;  %v1380_v32 = vadd.f32 %v3203_v48, %v1379_v30 }
 0x111   : > { %1739 = vst [vmem:[%s3209_s19 + $0x58] sm:$0xff] %v985_v27  ;;  %1819 = vst [vmem:[%s3209_s19 + $0x2d8] sm:$0xff] %v1385_v28 }
 0x112   : > { %1738 = vst [vmem:[%s3209_s19 + $0x50] sm:$0xff] %v980_v31  ;;  %1818 = vst [vmem:[%s3209_s19 + $0x2d0] sm:$0xff] %v1380_v32  ;;  %v2367_v33 = vpop.f32.mrb[12].mxu0  ;;  %v2487_v34 = vpop.f32.mrb[12].mxu1 }
 0x113   : > { %v995_v35 = vadd.f32 %v2367_v33, %v3203_v48  ;;  %v1395_v36 = vadd.f32 %v2487_v34, %v3203_v48  ;;  %v989_v37 = vpop.f32.mrb[13].mxu0  ;;  %v1389_v38 = vpop.f32.mrb[13].mxu1 }
 0x114   : > { %v990_v39 = vadd.f32 %v3203_v48, %v989_v37  ;;  %v1390_v40 = vadd.f32 %v3203_v48, %v1389_v38 }
 0x115   : > { %1741 = vst [vmem:[%s3209_s19 + $0x68] sm:$0xff] %v995_v35  ;;  %1821 = vst [vmem:[%s3209_s19 + $0x2e8] sm:$0xff] %v1395_v36 }
 0x116   : > { %1740 = vst [vmem:[%s3209_s19 + $0x60] sm:$0xff] %v990_v39  ;;  %1820 = vst [vmem:[%s3209_s19 + $0x2e0] sm:$0xff] %v1390_v40  ;;  %v2370_v41 = vpop.f32.mrb[14].mxu0  ;;  %v2490_v42 = vpop.f32.mrb[14].mxu1 }
 0x117   : > { %v1005_v43 = vadd.f32 %v2370_v41, %v3203_v48  ;;  %v1405_v44 = vadd.f32 %v2490_v42, %v3203_v48  ;;  %v999_v45 = vpop.f32.mrb[15].mxu0  ;;  %v1399_v46 = vpop.f32.mrb[15].mxu1 }
 0x118   : > { %v1000_v47 = vadd.f32 %v3203_v48, %v999_v45  ;;  %v1400_v49 = vadd.f32 %v3203_v48, %v1399_v46 }
 0x119   : > { %1743 = vst [vmem:[%s3209_s19 + $0x78] sm:$0xff] %v1005_v43  ;;  %1823 = vst [vmem:[%s3209_s19 + $0x2f8] sm:$0xff] %v1405_v44 }
 0x11a   : > { %1742 = vst [vmem:[%s3209_s19 + $0x70] sm:$0xff] %v1000_v47  ;;  %1822 = vst [vmem:[%s3209_s19 + $0x2f0] sm:$0xff] %v1400_v49  ;;  %v2373_v50 = vpop.f32.mrb[16].mxu0  ;;  %v2493_v51 = vpop.f32.mrb[16].mxu1 }
 0x11b   : > { %v1015_v52 = vadd.f32 %v2373_v50, %v3203_v48  ;;  %v1415_v53 = vadd.f32 %v2493_v51, %v3203_v48  ;;  %v1009_v54 = vpop.f32.mrb[17].mxu0  ;;  %v1409_v55 = vpop.f32.mrb[17].mxu1 }
 0x11c   : > { %v1010_v56 = vadd.f32 %v3203_v48, %v1009_v54  ;;  %v1410_v57 = vadd.f32 %v3203_v48, %v1409_v55 }
 0x11d   : > { %1745 = vst [vmem:[%s3209_s19 + $0x88] sm:$0xff] %v1015_v52  ;;  %1825 = vst [vmem:[%s3209_s19 + $0x308] sm:$0xff] %v1415_v53 }
 0x11e   : > { %1744 = vst [vmem:[%s3209_s19 + $0x80] sm:$0xff] %v1010_v56  ;;  %1824 = vst [vmem:[%s3209_s19 + $0x300] sm:$0xff] %v1410_v57  ;;  %v2376_v58 = vpop.f32.mrb[18].mxu0  ;;  %v2496_v59 = vpop.f32.mrb[18].mxu1 }
 0x11f   : > { %v1025_v60 = vadd.f32 %v2376_v58, %v3203_v48  ;;  %v1425_v61 = vadd.f32 %v2496_v59, %v3203_v48  ;;  %v1019_v62 = vpop.f32.mrb[19].mxu0  ;;  %v1419_v63 = vpop.f32.mrb[19].mxu1 }
 0x120   : > { %v1020_v0 = vadd.f32 %v3203_v48, %v1019_v62  ;;  %v1420_v1 = vadd.f32 %v3203_v48, %v1419_v63 }
 0x121   : > { %1747 = vst [vmem:[%s3209_s19 + $0x98] sm:$0xff] %v1025_v60  ;;  %1827 = vst [vmem:[%s3209_s19 + $0x318] sm:$0xff] %v1425_v61 }
 0x122   : > { %1746 = vst [vmem:[%s3209_s19 + $0x90] sm:$0xff] %v1020_v0  ;;  %1826 = vst [vmem:[%s3209_s19 + $0x310] sm:$0xff] %v1420_v1  ;;  %v2379_v2 = vpop.f32.mrb[20].mxu0  ;;  %v2499_v3 = vpop.f32.mrb[20].mxu1 }
 0x123   : > { %v1035_v4 = vadd.f32 %v2379_v2, %v3203_v48  ;;  %v1435_v5 = vadd.f32 %v2499_v3, %v3203_v48  ;;  %v1029_v6 = vpop.f32.mrb[21].mxu0  ;;  %v1429_v7 = vpop.f32.mrb[21].mxu1 }
 0x124   : > { %v1030_v8 = vadd.f32 %v3203_v48, %v1029_v6  ;;  %v1430_v9 = vadd.f32 %v3203_v48, %v1429_v7 }
 0x125   : > { %1749 = vst [vmem:[%s3209_s19 + $0xa8] sm:$0xff] %v1035_v4  ;;  %1829 = vst [vmem:[%s3209_s19 + $0x328] sm:$0xff] %v1435_v5 }
 0x126   : > { %1748 = vst [vmem:[%s3209_s19 + $0xa0] sm:$0xff] %v1030_v8  ;;  %1828 = vst [vmem:[%s3209_s19 + $0x320] sm:$0xff] %v1430_v9  ;;  %v2382_v10 = vpop.f32.mrb[22].mxu0  ;;  %v2502_v11 = vpop.f32.mrb[22].mxu1 }
 0x127   : > { %v1045_v12 = vadd.f32 %v2382_v10, %v3203_v48  ;;  %v1445_v13 = vadd.f32 %v2502_v11, %v3203_v48  ;;  %v1039_v14 = vpop.f32.mrb[23].mxu0  ;;  %v1439_v15 = vpop.f32.mrb[23].mxu1 }
 0x128   : > { %v1040_v16 = vadd.f32 %v3203_v48, %v1039_v14  ;;  %v1440_v17 = vadd.f32 %v3203_v48, %v1439_v15 }
 0x129   : > { %1751 = vst [vmem:[%s3209_s19 + $0xb8] sm:$0xff] %v1045_v12  ;;  %1831 = vst [vmem:[%s3209_s19 + $0x338] sm:$0xff] %v1445_v13 }
 0x12a   : > { %1750 = vst [vmem:[%s3209_s19 + $0xb0] sm:$0xff] %v1040_v16  ;;  %1830 = vst [vmem:[%s3209_s19 + $0x330] sm:$0xff] %v1440_v17  ;;  %v2385_v18 = vpop.f32.mrb[24].mxu0  ;;  %v2505_v19 = vpop.f32.mrb[24].mxu1 }
 0x12b   : > { %v1055_v20 = vadd.f32 %v2385_v18, %v3203_v48  ;;  %v1455_v21 = vadd.f32 %v2505_v19, %v3203_v48  ;;  %v1049_v22 = vpop.f32.mrb[25].mxu0  ;;  %v1449_v23 = vpop.f32.mrb[25].mxu1 }
 0x12c   : > { %v1050_v24 = vadd.f32 %v3203_v48, %v1049_v22  ;;  %v1450_v25 = vadd.f32 %v3203_v48, %v1449_v23 }
 0x12d   : > { %1753 = vst [vmem:[%s3209_s19 + $0xc8] sm:$0xff] %v1055_v20  ;;  %1833 = vst [vmem:[%s3209_s19 + $0x348] sm:$0xff] %v1455_v21 }
 0x12e   : > { %1752 = vst [vmem:[%s3209_s19 + $0xc0] sm:$0xff] %v1050_v24  ;;  %1832 = vst [vmem:[%s3209_s19 + $0x340] sm:$0xff] %v1450_v25  ;;  %v2388_v26 = vpop.f32.mrb[26].mxu0  ;;  %v2508_v27 = vpop.f32.mrb[26].mxu1 }
 0x12f   : > { %v1065_v28 = vadd.f32 %v2388_v26, %v3203_v48  ;;  %v1465_v29 = vadd.f32 %v2508_v27, %v3203_v48  ;;  %v1059_v30 = vpop.f32.mrb[27].mxu0  ;;  %v1459_v31 = vpop.f32.mrb[27].mxu1 }
 0x130   : > { %v1060_v32 = vadd.f32 %v3203_v48, %v1059_v30  ;;  %v1460_v33 = vadd.f32 %v3203_v48, %v1459_v31 }
 0x131   : > { %1755 = vst [vmem:[%s3209_s19 + $0xd8] sm:$0xff] %v1065_v28  ;;  %1835 = vst [vmem:[%s3209_s19 + $0x358] sm:$0xff] %v1465_v29 }
 0x132   : > { %1754 = vst [vmem:[%s3209_s19 + $0xd0] sm:$0xff] %v1060_v32  ;;  %1834 = vst [vmem:[%s3209_s19 + $0x350] sm:$0xff] %v1460_v33  ;;  %v2391_v34 = vpop.f32.mrb[28].mxu0  ;;  %v2511_v35 = vpop.f32.mrb[28].mxu1 }
 0x133   : > { %v1075_v36 = vadd.f32 %v2391_v34, %v3203_v48  ;;  %v1475_v37 = vadd.f32 %v2511_v35, %v3203_v48  ;;  %v1069_v38 = vpop.f32.mrb[29].mxu0  ;;  %v1469_v39 = vpop.f32.mrb[29].mxu1 }
 0x134   : > { %v1070_v40 = vadd.f32 %v3203_v48, %v1069_v38  ;;  %v1470_v41 = vadd.f32 %v3203_v48, %v1469_v39 }
 0x135   : > { %1757 = vst [vmem:[%s3209_s19 + $0xe8] sm:$0xff] %v1075_v36  ;;  %1837 = vst [vmem:[%s3209_s19 + $0x368] sm:$0xff] %v1475_v37 }
 0x136   : > { %1756 = vst [vmem:[%s3209_s19 + $0xe0] sm:$0xff] %v1070_v40  ;;  %1836 = vst [vmem:[%s3209_s19 + $0x360] sm:$0xff] %v1470_v41  ;;  %v2394_v42 = vpop.f32.mrb[30].mxu0  ;;  %v2514_v43 = vpop.f32.mrb[30].mxu1 }
 0x137   : > { %v1085_v44 = vadd.f32 %v2394_v42, %v3203_v48  ;;  %v1485_v45 = vadd.f32 %v2514_v43, %v3203_v48  ;;  %v1079_v46 = vpop.f32.mrb[31].mxu0  ;;  %v1479_v47 = vpop.f32.mrb[31].mxu1 }
 0x138   : > { %v1080_v49 = vadd.f32 %v3203_v48, %v1079_v46  ;;  %v1480_v50 = vadd.f32 %v3203_v48, %v1479_v47 }
 0x139   : > { %1759 = vst [vmem:[%s3209_s19 + $0xf8] sm:$0xff] %v1085_v44  ;;  %1839 = vst [vmem:[%s3209_s19 + $0x378] sm:$0xff] %v1485_v45 }
 0x13a   : > { %1758 = vst [vmem:[%s3209_s19 + $0xf0] sm:$0xff] %v1080_v49  ;;  %1838 = vst [vmem:[%s3209_s19 + $0x370] sm:$0xff] %v1480_v50  ;;  %v2397_v51 = vpop.f32.mrb[32].mxu0  ;;  %v2517_v52 = vpop.f32.mrb[32].mxu1 }
 0x13b   : > { %v1095_v53 = vadd.f32 %v2397_v51, %v3203_v48  ;;  %v1495_v54 = vadd.f32 %v2517_v52, %v3203_v48  ;;  %v1089_v55 = vpop.f32.mrb[33].mxu0  ;;  %v1489_v56 = vpop.f32.mrb[33].mxu1 }
 0x13c   : > { %v1090_v57 = vadd.f32 %v3203_v48, %v1089_v55  ;;  %v1490_v58 = vadd.f32 %v3203_v48, %v1489_v56 }
 0x13d   : > { %1761 = vst [vmem:[%s3209_s19 + $0x108] sm:$0xff] %v1095_v53  ;;  %1841 = vst [vmem:[%s3209_s19 + $0x388] sm:$0xff] %v1495_v54 }
 0x13e   : > { %1760 = vst [vmem:[%s3209_s19 + $0x100] sm:$0xff] %v1090_v57  ;;  %1840 = vst [vmem:[%s3209_s19 + $0x380] sm:$0xff] %v1490_v58  ;;  %v2400_v59 = vpop.f32.mrb[34].mxu0  ;;  %v2520_v60 = vpop.f32.mrb[34].mxu1 }
 0x13f   : > { %v1105_v61 = vadd.f32 %v2400_v59, %v3203_v48  ;;  %v1505_v62 = vadd.f32 %v2520_v60, %v3203_v48  ;;  %v1099_v63 = vpop.f32.mrb[35].mxu0  ;;  %v1499_v0 = vpop.f32.mrb[35].mxu1 }
 0x140   : > { %v1100_v1 = vadd.f32 %v3203_v48, %v1099_v63  ;;  %v1500_v2 = vadd.f32 %v3203_v48, %v1499_v0 }
 0x141   : > { %1763 = vst [vmem:[%s3209_s19 + $0x118] sm:$0xff] %v1105_v61  ;;  %1843 = vst [vmem:[%s3209_s19 + $0x398] sm:$0xff] %v1505_v62 }
 0x142   : > { %1762 = vst [vmem:[%s3209_s19 + $0x110] sm:$0xff] %v1100_v1  ;;  %1842 = vst [vmem:[%s3209_s19 + $0x390] sm:$0xff] %v1500_v2  ;;  %v2403_v3 = vpop.f32.mrb[36].mxu0  ;;  %v2523_v4 = vpop.f32.mrb[36].mxu1 }
 0x143   : > { %v1115_v5 = vadd.f32 %v2403_v3, %v3203_v48  ;;  %v1515_v6 = vadd.f32 %v2523_v4, %v3203_v48  ;;  %v1109_v7 = vpop.f32.mrb[37].mxu0  ;;  %v1509_v8 = vpop.f32.mrb[37].mxu1 }
 0x144   : > { %v1110_v9 = vadd.f32 %v3203_v48, %v1109_v7  ;;  %v1510_v10 = vadd.f32 %v3203_v48, %v1509_v8 }
 0x145   : > { %1765 = vst [vmem:[%s3209_s19 + $0x128] sm:$0xff] %v1115_v5  ;;  %1845 = vst [vmem:[%s3209_s19 + $0x3a8] sm:$0xff] %v1515_v6 }
 0x146   : > { %1764 = vst [vmem:[%s3209_s19 + $0x120] sm:$0xff] %v1110_v9  ;;  %1844 = vst [vmem:[%s3209_s19 + $0x3a0] sm:$0xff] %v1510_v10  ;;  %v2406_v11 = vpop.f32.mrb[38].mxu0  ;;  %v2526_v12 = vpop.f32.mrb[38].mxu1 }
 0x147   : > { %v1125_v13 = vadd.f32 %v2406_v11, %v3203_v48  ;;  %v1525_v14 = vadd.f32 %v2526_v12, %v3203_v48  ;;  %v1119_v15 = vpop.f32.mrb[39].mxu0  ;;  %v1519_v16 = vpop.f32.mrb[39].mxu1 }
 0x148   : > { %v1120_v17 = vadd.f32 %v3203_v48, %v1119_v15  ;;  %v1520_v18 = vadd.f32 %v3203_v48, %v1519_v16 }
 0x149   : > { %1767 = vst [vmem:[%s3209_s19 + $0x138] sm:$0xff] %v1125_v13  ;;  %1847 = vst [vmem:[%s3209_s19 + $0x3b8] sm:$0xff] %v1525_v14 }
 0x14a   : > { %1766 = vst [vmem:[%s3209_s19 + $0x130] sm:$0xff] %v1120_v17  ;;  %1846 = vst [vmem:[%s3209_s19 + $0x3b0] sm:$0xff] %v1520_v18  ;;  %v2409_v19 = vpop.f32.mrb[40].mxu0  ;;  %v2529_v20 = vpop.f32.mrb[40].mxu1 }
 0x14b   : > { %v1135_v21 = vadd.f32 %v2409_v19, %v3203_v48  ;;  %v1535_v22 = vadd.f32 %v2529_v20, %v3203_v48  ;;  %v1129_v23 = vpop.f32.mrb[41].mxu0  ;;  %v1529_v24 = vpop.f32.mrb[41].mxu1 }
 0x14c   : > { %v1130_v25 = vadd.f32 %v3203_v48, %v1129_v23  ;;  %v1530_v26 = vadd.f32 %v3203_v48, %v1529_v24 }
 0x14d   : > { %1769 = vst [vmem:[%s3209_s19 + $0x148] sm:$0xff] %v1135_v21  ;;  %1849 = vst [vmem:[%s3209_s19 + $0x3c8] sm:$0xff] %v1535_v22 }
 0x14e   : > { %1768 = vst [vmem:[%s3209_s19 + $0x140] sm:$0xff] %v1130_v25  ;;  %1848 = vst [vmem:[%s3209_s19 + $0x3c0] sm:$0xff] %v1530_v26  ;;  %v2412_v27 = vpop.f32.mrb[42].mxu0  ;;  %v2532_v28 = vpop.f32.mrb[42].mxu1 }
 0x14f   : > { %v1145_v29 = vadd.f32 %v2412_v27, %v3203_v48  ;;  %v1545_v30 = vadd.f32 %v2532_v28, %v3203_v48  ;;  %v1139_v31 = vpop.f32.mrb[43].mxu0  ;;  %v1539_v32 = vpop.f32.mrb[43].mxu1 }
 0x150   : > { %v1140_v33 = vadd.f32 %v3203_v48, %v1139_v31  ;;  %v1540_v34 = vadd.f32 %v3203_v48, %v1539_v32 }
 0x151   : > { %1771 = vst [vmem:[%s3209_s19 + $0x158] sm:$0xff] %v1145_v29  ;;  %1851 = vst [vmem:[%s3209_s19 + $0x3d8] sm:$0xff] %v1545_v30 }
 0x152   : > { %1770 = vst [vmem:[%s3209_s19 + $0x150] sm:$0xff] %v1140_v33  ;;  %1850 = vst [vmem:[%s3209_s19 + $0x3d0] sm:$0xff] %v1540_v34  ;;  %v2415_v35 = vpop.f32.mrb[44].mxu0  ;;  %v2535_v36 = vpop.f32.mrb[44].mxu1 }
 0x153   : > { %v1155_v37 = vadd.f32 %v2415_v35, %v3203_v48  ;;  %v1555_v38 = vadd.f32 %v2535_v36, %v3203_v48  ;;  %v1149_v39 = vpop.f32.mrb[45].mxu0  ;;  %v1549_v40 = vpop.f32.mrb[45].mxu1 }
 0x154   : > { %v1150_v41 = vadd.f32 %v3203_v48, %v1149_v39  ;;  %v1550_v42 = vadd.f32 %v3203_v48, %v1549_v40 }
 0x155   : > { %1773 = vst [vmem:[%s3209_s19 + $0x168] sm:$0xff] %v1155_v37  ;;  %1853 = vst [vmem:[%s3209_s19 + $0x3e8] sm:$0xff] %v1555_v38 }
 0x156   : > { %1772 = vst [vmem:[%s3209_s19 + $0x160] sm:$0xff] %v1150_v41  ;;  %1852 = vst [vmem:[%s3209_s19 + $0x3e0] sm:$0xff] %v1550_v42  ;;  %v2418_v43 = vpop.f32.mrb[46].mxu0  ;;  %v2538_v44 = vpop.f32.mrb[46].mxu1 }
 0x157   : > { %v1165_v45 = vadd.f32 %v2418_v43, %v3203_v48  ;;  %v1565_v46 = vadd.f32 %v2538_v44, %v3203_v48  ;;  %v1159_v47 = vpop.f32.mrb[47].mxu0  ;;  %v1559_v49 = vpop.f32.mrb[47].mxu1 }
 0x158   : > { %v1160_v50 = vadd.f32 %v3203_v48, %v1159_v47  ;;  %v1560_v51 = vadd.f32 %v3203_v48, %v1559_v49 }
 0x159   : > { %1775 = vst [vmem:[%s3209_s19 + $0x178] sm:$0xff] %v1165_v45  ;;  %1855 = vst [vmem:[%s3209_s19 + $0x3f8] sm:$0xff] %v1565_v46 }
 0x15a   : > { %1774 = vst [vmem:[%s3209_s19 + $0x170] sm:$0xff] %v1160_v50  ;;  %1854 = vst [vmem:[%s3209_s19 + $0x3f0] sm:$0xff] %v1560_v51  ;;  %v2421_v52 = vpop.f32.mrb[48].mxu0  ;;  %v2541_v53 = vpop.f32.mrb[48].mxu1 }
 0x15b   : > { %v1175_v54 = vadd.f32 %v2421_v52, %v3203_v48  ;;  %v1575_v55 = vadd.f32 %v2541_v53, %v3203_v48  ;;  %v1169_v56 = vpop.f32.mrb[49].mxu0  ;;  %v1569_v57 = vpop.f32.mrb[49].mxu1 }
 0x15c   : > { %v1170_v58 = vadd.f32 %v3203_v48, %v1169_v56  ;;  %v1570_v59 = vadd.f32 %v3203_v48, %v1569_v57 }
 0x15d   : > { %1777 = vst [vmem:[%s3209_s19 + $0x188] sm:$0xff] %v1175_v54  ;;  %1857 = vst [vmem:[%s3209_s19 + $0x408] sm:$0xff] %v1575_v55 }
 0x15e   : > { %1776 = vst [vmem:[%s3209_s19 + $0x180] sm:$0xff] %v1170_v58  ;;  %1856 = vst [vmem:[%s3209_s19 + $0x400] sm:$0xff] %v1570_v59  ;;  %v2424_v60 = vpop.f32.mrb[50].mxu0  ;;  %v2544_v61 = vpop.f32.mrb[50].mxu1 }
 0x15f   : > { %v1185_v62 = vadd.f32 %v2424_v60, %v3203_v48  ;;  %v1585_v63 = vadd.f32 %v2544_v61, %v3203_v48  ;;  %v1179_v0 = vpop.f32.mrb[51].mxu0  ;;  %v1579_v1 = vpop.f32.mrb[51].mxu1 }
 0x160   : > { %v1180_v2 = vadd.f32 %v3203_v48, %v1179_v0  ;;  %v1580_v3 = vadd.f32 %v3203_v48, %v1579_v1 }
 0x161   : > { %1779 = vst [vmem:[%s3209_s19 + $0x198] sm:$0xff] %v1185_v62  ;;  %1859 = vst [vmem:[%s3209_s19 + $0x418] sm:$0xff] %v1585_v63 }
 0x162   : > { %1778 = vst [vmem:[%s3209_s19 + $0x190] sm:$0xff] %v1180_v2  ;;  %1858 = vst [vmem:[%s3209_s19 + $0x410] sm:$0xff] %v1580_v3  ;;  %v2427_v4 = vpop.f32.mrb[52].mxu0  ;;  %v2547_v5 = vpop.f32.mrb[52].mxu1 }
 0x163   : > { %v1195_v6 = vadd.f32 %v2427_v4, %v3203_v48  ;;  %v1595_v7 = vadd.f32 %v2547_v5, %v3203_v48  ;;  %v1189_v8 = vpop.f32.mrb[53].mxu0  ;;  %v1589_v9 = vpop.f32.mrb[53].mxu1 }
 0x164   : > { %v1190_v10 = vadd.f32 %v3203_v48, %v1189_v8  ;;  %v1590_v11 = vadd.f32 %v3203_v48, %v1589_v9 }
 0x165   : > { %1781 = vst [vmem:[%s3209_s19 + $0x1a8] sm:$0xff] %v1195_v6  ;;  %1861 = vst [vmem:[%s3209_s19 + $0x428] sm:$0xff] %v1595_v7 }
 0x166   : > { %1780 = vst [vmem:[%s3209_s19 + $0x1a0] sm:$0xff] %v1190_v10  ;;  %1860 = vst [vmem:[%s3209_s19 + $0x420] sm:$0xff] %v1590_v11  ;;  %v2430_v12 = vpop.f32.mrb[54].mxu0  ;;  %v2550_v13 = vpop.f32.mrb[54].mxu1 }
 0x167   : > { %v1205_v14 = vadd.f32 %v2430_v12, %v3203_v48  ;;  %v1605_v15 = vadd.f32 %v2550_v13, %v3203_v48  ;;  %v1199_v16 = vpop.f32.mrb[55].mxu0  ;;  %v1599_v17 = vpop.f32.mrb[55].mxu1 }
 0x168   : > { %v1200_v18 = vadd.f32 %v3203_v48, %v1199_v16  ;;  %v1600_v19 = vadd.f32 %v3203_v48, %v1599_v17 }
 0x169   : > { %1783 = vst [vmem:[%s3209_s19 + $0x1b8] sm:$0xff] %v1205_v14  ;;  %1863 = vst [vmem:[%s3209_s19 + $0x438] sm:$0xff] %v1605_v15 }
 0x16a   : > { %1782 = vst [vmem:[%s3209_s19 + $0x1b0] sm:$0xff] %v1200_v18  ;;  %1862 = vst [vmem:[%s3209_s19 + $0x430] sm:$0xff] %v1600_v19  ;;  %v2433_v20 = vpop.f32.mrb[56].mxu0  ;;  %v2553_v21 = vpop.f32.mrb[56].mxu1 }
 0x16b   : > { %v1215_v22 = vadd.f32 %v2433_v20, %v3203_v48  ;;  %v1615_v23 = vadd.f32 %v2553_v21, %v3203_v48  ;;  %v1209_v24 = vpop.f32.mrb[57].mxu0  ;;  %v1609_v25 = vpop.f32.mrb[57].mxu1 }
 0x16c   : > { %v1210_v26 = vadd.f32 %v3203_v48, %v1209_v24  ;;  %v1610_v27 = vadd.f32 %v3203_v48, %v1609_v25 }
 0x16d   : > { %1785 = vst [vmem:[%s3209_s19 + $0x1c8] sm:$0xff] %v1215_v22  ;;  %1865 = vst [vmem:[%s3209_s19 + $0x448] sm:$0xff] %v1615_v23 }
 0x16e   : > { %1784 = vst [vmem:[%s3209_s19 + $0x1c0] sm:$0xff] %v1210_v26  ;;  %1864 = vst [vmem:[%s3209_s19 + $0x440] sm:$0xff] %v1610_v27  ;;  %v2436_v28 = vpop.f32.mrb[58].mxu0  ;;  %v2556_v29 = vpop.f32.mrb[58].mxu1 }
 0x16f   : > { %v1225_v30 = vadd.f32 %v2436_v28, %v3203_v48  ;;  %v1625_v31 = vadd.f32 %v2556_v29, %v3203_v48  ;;  %v1219_v32 = vpop.f32.mrb[59].mxu0  ;;  %v1619_v33 = vpop.f32.mrb[59].mxu1 }
 0x170   : > { %v1220_v34 = vadd.f32 %v3203_v48, %v1219_v32  ;;  %v1620_v35 = vadd.f32 %v3203_v48, %v1619_v33 }
 0x171   : > { %1787 = vst [vmem:[%s3209_s19 + $0x1d8] sm:$0xff] %v1225_v30  ;;  %1867 = vst [vmem:[%s3209_s19 + $0x458] sm:$0xff] %v1625_v31 }
 0x172   : > { %1786 = vst [vmem:[%s3209_s19 + $0x1d0] sm:$0xff] %v1220_v34  ;;  %1866 = vst [vmem:[%s3209_s19 + $0x450] sm:$0xff] %v1620_v35  ;;  %v2439_v36 = vpop.f32.mrb[60].mxu0  ;;  %v2559_v37 = vpop.f32.mrb[60].mxu1 }
 0x173   : > { %v1235_v38 = vadd.f32 %v2439_v36, %v3203_v48  ;;  %v1635_v39 = vadd.f32 %v2559_v37, %v3203_v48  ;;  %v1229_v40 = vpop.f32.mrb[61].mxu0  ;;  %v1629_v41 = vpop.f32.mrb[61].mxu1 }
 0x174   : > { %v1230_v42 = vadd.f32 %v3203_v48, %v1229_v40  ;;  %v1630_v43 = vadd.f32 %v3203_v48, %v1629_v41 }
 0x175   : > { %1789 = vst [vmem:[%s3209_s19 + $0x1e8] sm:$0xff] %v1235_v38  ;;  %1869 = vst [vmem:[%s3209_s19 + $0x468] sm:$0xff] %v1635_v39 }
 0x176   : > { %1788 = vst [vmem:[%s3209_s19 + $0x1e0] sm:$0xff] %v1230_v42  ;;  %1868 = vst [vmem:[%s3209_s19 + $0x460] sm:$0xff] %v1630_v43  ;;  %v2442_v44 = vpop.f32.mrb[62].mxu0  ;;  %v2562_v45 = vpop.f32.mrb[62].mxu1 }
 0x177   : > { %v1245_v46 = vadd.f32 %v2442_v44, %v3203_v48  ;;  %v1645_v47 = vadd.f32 %v2562_v45, %v3203_v48  ;;  %v1239_v49 = vpop.f32.mrb[63].mxu0  ;;  %v1639_v50 = vpop.f32.mrb[63].mxu1 }
 0x178   : > { %v1240_v51 = vadd.f32 %v3203_v48, %v1239_v49  ;;  %v1640_v52 = vadd.f32 %v3203_v48, %v1639_v50 }
 0x179   : > { %1791 = vst [vmem:[%s3209_s19 + $0x1f8] sm:$0xff] %v1245_v46  ;;  %1871 = vst [vmem:[%s3209_s19 + $0x478] sm:$0xff] %v1645_v47 }
 0x17a   : > { %1790 = vst [vmem:[%s3209_s19 + $0x1f0] sm:$0xff] %v1240_v51  ;;  %1870 = vst [vmem:[%s3209_s19 + $0x470] sm:$0xff] %v1640_v52  ;;  %v2445_v53 = vpop.f32.mrb[64].mxu0  ;;  %v2565_v54 = vpop.f32.mrb[64].mxu1 }
 0x17b   : > { %v1255_v55 = vadd.f32 %v2445_v53, %v3203_v48  ;;  %v1655_v56 = vadd.f32 %v2565_v54, %v3203_v48  ;;  %v1249_v57 = vpop.f32.mrb[65].mxu0  ;;  %v1649_v58 = vpop.f32.mrb[65].mxu1 }
 0x17c   : > { %v1250_v59 = vadd.f32 %v3203_v48, %v1249_v57  ;;  %v1650_v60 = vadd.f32 %v3203_v48, %v1649_v58 }
 0x17d   : > { %1793 = vst [vmem:[%s3209_s19 + $0x208] sm:$0xff] %v1255_v55  ;;  %1873 = vst [vmem:[%s3209_s19 + $0x488] sm:$0xff] %v1655_v56 }
 0x17e   : > { %1792 = vst [vmem:[%s3209_s19 + $0x200] sm:$0xff] %v1250_v59  ;;  %1872 = vst [vmem:[%s3209_s19 + $0x480] sm:$0xff] %v1650_v60  ;;  %v2448_v61 = vpop.f32.mrb[66].mxu0  ;;  %v2568_v62 = vpop.f32.mrb[66].mxu1 }
 0x17f   : > { %v1265_v63 = vadd.f32 %v2448_v61, %v3203_v48  ;;  %v1665_v0 = vadd.f32 %v2568_v62, %v3203_v48  ;;  %v1259_v1 = vpop.f32.mrb[67].mxu0  ;;  %v1659_v2 = vpop.f32.mrb[67].mxu1 }
 0x180   : > { %v1260_v3 = vadd.f32 %v3203_v48, %v1259_v1  ;;  %v1660_v4 = vadd.f32 %v3203_v48, %v1659_v2 }
 0x181   : > { %1795 = vst [vmem:[%s3209_s19 + $0x218] sm:$0xff] %v1265_v63  ;;  %1875 = vst [vmem:[%s3209_s19 + $0x498] sm:$0xff] %v1665_v0 }
 0x182   : > { %1794 = vst [vmem:[%s3209_s19 + $0x210] sm:$0xff] %v1260_v3  ;;  %1874 = vst [vmem:[%s3209_s19 + $0x490] sm:$0xff] %v1660_v4  ;;  %v2451_v5 = vpop.f32.mrb[68].mxu0  ;;  %v2571_v6 = vpop.f32.mrb[68].mxu1 }
 0x183   : > { %v1275_v7 = vadd.f32 %v2451_v5, %v3203_v48  ;;  %v1675_v8 = vadd.f32 %v2571_v6, %v3203_v48  ;;  %v1269_v9 = vpop.f32.mrb[69].mxu0  ;;  %v1669_v10 = vpop.f32.mrb[69].mxu1 }
 0x184   : > { %v1270_v11 = vadd.f32 %v3203_v48, %v1269_v9  ;;  %v1670_v12 = vadd.f32 %v3203_v48, %v1669_v10 }
 0x185   : > { %1797 = vst [vmem:[%s3209_s19 + $0x228] sm:$0xff] %v1275_v7  ;;  %1877 = vst [vmem:[%s3209_s19 + $0x4a8] sm:$0xff] %v1675_v8 }
 0x186   : > { %1796 = vst [vmem:[%s3209_s19 + $0x220] sm:$0xff] %v1270_v11  ;;  %1876 = vst [vmem:[%s3209_s19 + $0x4a0] sm:$0xff] %v1670_v12  ;;  %v2454_v13 = vpop.f32.mrb[70].mxu0  ;;  %v2574_v14 = vpop.f32.mrb[70].mxu1 }
 0x187   : > { %v1285_v15 = vadd.f32 %v2454_v13, %v3203_v48  ;;  %v1685_v16 = vadd.f32 %v2574_v14, %v3203_v48  ;;  %v1279_v17 = vpop.f32.mrb[71].mxu0  ;;  %v1679_v18 = vpop.f32.mrb[71].mxu1 }
 0x188   : > { %v1280_v19 = vadd.f32 %v3203_v48, %v1279_v17  ;;  %v1680_v20 = vadd.f32 %v3203_v48, %v1679_v18 }
 0x189   : > { %1799 = vst [vmem:[%s3209_s19 + $0x238] sm:$0xff] %v1285_v15  ;;  %1879 = vst [vmem:[%s3209_s19 + $0x4b8] sm:$0xff] %v1685_v16 }
 0x18a   : > { %1798 = vst [vmem:[%s3209_s19 + $0x230] sm:$0xff] %v1280_v19  ;;  %1878 = vst [vmem:[%s3209_s19 + $0x4b0] sm:$0xff] %v1680_v20  ;;  %v2457_v21 = vpop.f32.mrb[72].mxu0  ;;  %v2577_v22 = vpop.f32.mrb[72].mxu1 }
 0x18b   : > { %v1295_v23 = vadd.f32 %v2457_v21, %v3203_v48  ;;  %v1695_v24 = vadd.f32 %v2577_v22, %v3203_v48  ;;  %v1289_v25 = vpop.f32.mrb[73].mxu0  ;;  %v1689_v26 = vpop.f32.mrb[73].mxu1 }
 0x18c   : > { %v1290_v27 = vadd.f32 %v3203_v48, %v1289_v25  ;;  %v1690_v28 = vadd.f32 %v3203_v48, %v1689_v26 }
 0x18d   : > { %1801 = vst [vmem:[%s3209_s19 + $0x248] sm:$0xff] %v1295_v23  ;;  %1881 = vst [vmem:[%s3209_s19 + $0x4c8] sm:$0xff] %v1695_v24 }
 0x18e   : > { %1800 = vst [vmem:[%s3209_s19 + $0x240] sm:$0xff] %v1290_v27  ;;  %1880 = vst [vmem:[%s3209_s19 + $0x4c0] sm:$0xff] %v1690_v28  ;;  %v2460_v29 = vpop.f32.mrb[74].mxu0  ;;  %v2580_v30 = vpop.f32.mrb[74].mxu1 }
 0x18f   : > { %v1305_v31 = vadd.f32 %v2460_v29, %v3203_v48  ;;  %v1705_v32 = vadd.f32 %v2580_v30, %v3203_v48  ;;  %v1299_v33 = vpop.f32.mrb[75].mxu0  ;;  %v1699_v34 = vpop.f32.mrb[75].mxu1 }
 0x190   : > { %v1300_v35 = vadd.f32 %v3203_v48, %v1299_v33  ;;  %v1700_v36 = vadd.f32 %v3203_v48, %v1699_v34 }
 0x191   : > { %1803 = vst [vmem:[%s3209_s19 + $0x258] sm:$0xff] %v1305_v31  ;;  %1883 = vst [vmem:[%s3209_s19 + $0x4d8] sm:$0xff] %v1705_v32 }
 0x192   : > { %1802 = vst [vmem:[%s3209_s19 + $0x250] sm:$0xff] %v1300_v35  ;;  %1882 = vst [vmem:[%s3209_s19 + $0x4d0] sm:$0xff] %v1700_v36  ;;  %v2463_v37 = vpop.f32.mrb[76].mxu0  ;;  %v2583_v38 = vpop.f32.mrb[76].mxu1 }
 0x193   : > { %v1315_v39 = vadd.f32 %v2463_v37, %v3203_v48  ;;  %v1715_v40 = vadd.f32 %v2583_v38, %v3203_v48  ;;  %v1309_v41 = vpop.f32.mrb[77].mxu0  ;;  %v1709_v42 = vpop.f32.mrb[77].mxu1 }
 0x194   : > { %v1310_v43 = vadd.f32 %v3203_v48, %v1309_v41  ;;  %v1710_v44 = vadd.f32 %v3203_v48, %v1709_v42 }
 0x195   : > { %1805 = vst [vmem:[%s3209_s19 + $0x268] sm:$0xff] %v1315_v39  ;;  %1885 = vst [vmem:[%s3209_s19 + $0x4e8] sm:$0xff] %v1715_v40 }
 0x196   : > { %1804 = vst [vmem:[%s3209_s19 + $0x260] sm:$0xff] %v1310_v43  ;;  %1884 = vst [vmem:[%s3209_s19 + $0x4e0] sm:$0xff] %v1710_v44  ;;  %v2466_v45 = vpop.f32.mrb[78].mxu0  ;;  %v2586_v46 = vpop.f32.mrb[78].mxu1 }
 0x197   : > { %v1325_v47 = vadd.f32 %v2466_v45, %v3203_v48  ;;  %v1725_v49 = vadd.f32 %v2586_v46, %v3203_v48  ;;  %v1319_v50 = vpop.f32.mrb[79].mxu0  ;;  %v1719_v51 = vpop.f32.mrb[79].mxu1 }
 0x198   : > { %v1320_v52 = vadd.f32 %v3203_v48, %v1319_v50  ;;  %v1720_v53 = vadd.f32 %v3203_v48, %v1719_v51 }
 0x199   : > { %1807 = vst [vmem:[%s3209_s19 + $0x278] sm:$0xff] %v1325_v47  ;;  %1887 = vst [vmem:[%s3209_s19 + $0x4f8] sm:$0xff] %v1725_v49 }
 0x19a   : > { %1806 = vst [vmem:[%s3209_s19 + $0x270] sm:$0xff] %v1320_v52  ;;  %1886 = vst [vmem:[%s3209_s19 + $0x4f0] sm:$0xff] %v1720_v53 }
 0x19b   : > { %2692 = shalt.err (!%p2689_p5)
}
 0x19c   : > { %s2693_s6 = scalar_lea.hbm %s3526_s27, 20480  ;;  %s2697_s9 = scalar_lea.hbm %s3587_s3, 40960 }
 0x19d   : > { %p2694_p6 = scmp.ne.s32.totalorder %s3526_s27, %s2693_s6  ;;  %p2698_p10 = scmp.lt.u32.totalorder %s3526_s27, %s3587_s3 }
 0x19e   : > { %p2699_p11 = scmp.lt.u32.totalorder %s2697_s9, %s2693_s6  ;;  %p2701_p13 = scmp.lt.u32.totalorder %s2693_s6, %s3526_s27 }
 0x19f   : > { %p2695_p7 = pnand %p2694_p6, %p2822_p4 }
 0x1a0   : > { %p2700_p12 = por %p2699_p11, %p2698_p10 }
 0x1a1   : > { %p2696_p9 = pneg %p2695_p7 }
 0x1a2   : > { %p2702_p0 = por %p2701_p13, %p2700_p12 }
 0x1a4   : > { %p2703_p1 = pnand %p2702_p0, %p2696_p9 }
 0x1a6   : > { %2706 = shalt.err (!%p2703_p1)
}
 0x1a7   : > { %s2760_s18 = smov 128   ;;  %s2761_s19 = smov 8  }
 0x1a8   : > { %2622 = dma.vmem_to_hbm [thread:$0]  (%p2822_p4), %s3528_s23, 20480, %s3526_s27, %s3538_s28, %s2760_s18, %s2760_s18, %s2761_s19  }
 0x1a9 PF: > { %p2628_p2 = scmp.ge.s32.totalorder %s2757_s17, 2  ;;  %s1919_s21 = sand.u32 1, %s2737_s12  }
 0x1aa   : > { %s1920_s15 = scalar_lea.sflag [#allocation3], %s1919_s21 }
 0x1ab   : > { %p2625_p3 = pnand %p2628_p2, %p2829_p8 }
 0x1ad   : > { %2732 = dma.done.wait (!%p2625_p3), %s1920_s15, 20480  }
 0x1ae   : > { %2734 = vsyncadd (!%p2625_p3), %s1920_s15, 4294946816  ;;  %s16_s17 = sadd.s32 1, %s2757_s17   ;;  %s3590_s12 = smov %s2741_s13 }
 0x1af   : > { %p13_p5 = scmp.ge.s32.totalorder %s16_s17, 4   ;;  %s3591_s13 = smov %s2745_s14 }
 0x1b0   : > { %s3592_s14 = smov %s2835_s25  ;;  %s3593_s15 = smov %s2753_s16 }
 0x1b1   : > { %s3594_s16 = smov %s3596_s20  ;;  %15 = sbr.rel (!%p13_p5) target bundleno = 4 (0x4), region = 67 }
 0x1b8   :  { %1925 = vsyncpa [#allocation3], 1 }
 0x1b9   :  { %1927 = vsyncpa [#allocation3 + $0x1], 1 }

</bundles_post_ra>
